<compile_context>
chip_gen: v7x
topology: tpu7x:2x2x1
jax: 0.10.0
libtpu: 0.0.40
codegen_flags: <defaults>
</compile_context>

<pallas_src>
import math

import jax
import jax.numpy as jnp
from jax import lax
from jax.experimental import pallas as pl
from jax.experimental.pallas import tpu as pltpu

# ---- problem sizes (small, consistent with the module) ----
B, T, C = 2, 8, 32          # batch, seq (== block_size), n_embd
N_HEAD = 4
HD = C // N_HEAD            # head dim
BT = B * T                  # rows processed per invocation
EPS = 1e-8
ROPE_THETA = 10000.0


# ------------------------- Pallas kernel -------------------------
def block_kernel(x_ref, scale_ref, wqkv_ref, bqkv_ref, cos_ref, sin_ref,
                 wproj_ref, bproj_ref, w1_ref, b1_ref, w2_ref, b2_ref,
                 o_ref, y_scratch):
    x = x_ref[...]                     # (B*T, C)   all batch rows at once
    scale = scale_ref[...]             # (1, C)

    def rmsnorm(v):
        norm = jnp.sqrt(jnp.sum(v * v, axis=-1, keepdims=True))
        rms = norm * (C ** -0.5)
        return (v / (rms + EPS)) * scale

    # ---------- attention branch: x + Attn(RMSNorm(x)) ----------
    xn = rmsnorm(x)
    # Widened projection: columns = [q | k | v | q@R | k@R]  (R folded on host)
    qkv = jnp.dot(xn, wqkv_ref[...], preferred_element_type=jnp.float32) + bqkv_ref[...]

    cos = cos_ref[...]                 # (B*T, C) pairwise-repeated, tiled over heads & batch
    sin = sin_ref[...]                 # (B*T, C)
    q = qkv[:, 0 * C:1 * C] * cos + qkv[:, 3 * C:4 * C] * sin
    k = qkv[:, 1 * C:2 * C] * cos + qkv[:, 4 * C:5 * C] * sin
    v = qkv[:, 2 * C:3 * C]

    # float causal mask ADDED to scores (exact SDPA float-mask semantics of the torch module)
    row = lax.broadcasted_iota(jnp.int32, (T, T), 0)
    col = lax.broadcasted_iota(jnp.int32, (T, T), 1)
    causal_add = (row >= col).astype(jnp.float32)

    inv_sqrt_hd = 1.0 / math.sqrt(HD)
    for b in range(B):                 # static unroll (B*N_HEAD = 8 tiny matmul pairs)
        r0 = b * T
        for h in range(N_HEAD):
            c0 = h * HD
            qh = q[r0:r0 + T, c0:c0 + HD]
            kh = k[r0:r0 + T, c0:c0 + HD]
            vh = v[r0:r0 + T, c0:c0 + HD]
            att = lax.dot_general(qh, kh, (((1,), (1,)), ((), ())),
                                  preferred_element_type=jnp.float32) * inv_sqrt_hd
            att = att + causal_add
            att = jax.nn.softmax(att, axis=-1)
            # write directly into the resident scratch (no lane-axis concatenate)
            y_scratch[r0:r0 + T, c0:c0 + HD] = jnp.dot(
                att, vh, preferred_element_type=jnp.float32)

    y = jnp.dot(y_scratch[...], wproj_ref[...],
                preferred_element_type=jnp.float32) + bproj_ref[...]
    out1 = x + y

    # ---------- feed-forward branch: out1 + FFN(RMSNorm(out1)) ----------
    xn2 = rmsnorm(out1)
    hidden = jnp.dot(xn2, w1_ref[...], preferred_element_type=jnp.float32) + b1_ref[...]
    hidden = jnp.maximum(hidden, 0.0)
    ff = jnp.dot(hidden, w2_ref[...], preferred_element_type=jnp.float32) + b2_ref[...]
    o_ref[...] = out1 + ff


def rope_rmsnorm_block(x, params):
    (scale, wqkv, bqkv, cos_f, sin_f, wproj, bproj, w1, b1, w2, b2) = params
    x2 = x.reshape(BT, C)

    def full2d(a):
        return pl.BlockSpec(a.shape, lambda i: (0, 0))

    operands = (x2, scale, wqkv, bqkv, cos_f, sin_f, wproj, bproj, w1, b1, w2, b2)
    in_specs = [full2d(a) for a in operands]

    out2 = pl.pallas_call(
        block_kernel,
        out_shape=jax.ShapeDtypeStruct((BT, C), jnp.float32),
        grid=(1,),                                    # single invocation: all rows at once
        in_specs=in_specs,
        out_specs=pl.BlockSpec((BT, C), lambda i: (0, 0)),
        scratch_shapes=[pltpu.VMEM((BT, C), jnp.float32)],
        compiler_params=pltpu.CompilerParams(dimension_semantics=("arbitrary",)),
    )(*operands)
    return out2.reshape(B, T, C)


# ------------------------- parameter setup -------------------------
def linear_init(key, fan_in, fan_out):
    bound = 1.0 / math.sqrt(fan_in)
    kw, kb = jax.random.split(key)
    w = jax.random.uniform(kw, (fan_in, fan_out), jnp.float32, -bound, bound)
    b = jax.random.uniform(kb, (1, fan_out), jnp.float32, -bound, bound)
    return w, b


def make_params():
    key = jax.random.PRNGKey(0)
    k_attn, k_proj, k_ff1, k_ff2 = jax.random.split(key, 4)

    scale = jnp.ones((1, C), jnp.float32)                       # RMSNorm scale (init = ones)
    wattn, battn = linear_init(k_attn, C, 3 * C)                # c_attn
    wproj, bproj = linear_init(k_proj, C, C)                    # c_proj
    w1, b1 = linear_init(k_ff1, C, 4 * C)                       # ffwd.net[0]
    w2, b2 = linear_init(k_ff2, 4 * C, C)                       # ffwd.net[2]

    # RoPE tables (interleaved-pair convention), tiled across heads along C and batch along rows
    inv_freq = 1.0 / (ROPE_THETA ** (jnp.arange(0, HD, 2, dtype=jnp.float32) / HD))
    pos = jnp.arange(T, dtype=jnp.float32)
    angles = pos[:, None] * inv_freq[None, :]                   # (T, HD//2)
    angles = jnp.repeat(angles, 2, axis=-1)                     # (T, HD) pairwise
    cos_t = jnp.tile(jnp.cos(angles), (1, N_HEAD))              # (T, C)
    sin_t = jnp.tile(jnp.sin(angles), (1, N_HEAD))              # (T, C)
    cos_f = jnp.tile(cos_t, (B, 1))                             # (B*T, C)
    sin_f = jnp.tile(sin_t, (B, 1))                             # (B*T, C)

    # rotate_half as a matmul:  (x @ Rh)[2m] = -x[2m+1],  (x @ Rh)[2m+1] = x[2m]
    Rh = jnp.zeros((HD, HD), jnp.float32)
    Rh = Rh.at[jnp.arange(0, HD, 2), jnp.arange(1, HD, 2)].set(1.0)
    Rh = Rh.at[jnp.arange(1, HD, 2), jnp.arange(0, HD, 2)].set(-1.0)
    rrot = jnp.kron(jnp.eye(N_HEAD, dtype=jnp.float32), Rh)     # (C, C)

    # Fold R into the QKV projection on the host: one (C, 5C) matmul in-kernel yields
    # q, k, v, q@R, k@R.  (xn @ Wq + bq) @ R == xn @ (Wq@R) + (bq@R).
    wq, wk, wv = wattn[:, :C], wattn[:, C:2 * C], wattn[:, 2 * C:]
    bq, bk, bv = battn[:, :C], battn[:, C:2 * C], battn[:, 2 * C:]
    wqkv = jnp.concatenate([wq, wk, wv, wq @ rrot, wk @ rrot], axis=1)   # (C, 5C)
    bqkv = jnp.concatenate([bq, bk, bv, bq @ rrot, bk @ rrot], axis=1)   # (1, 5C)

    return (scale, wqkv, bqkv, cos_f, sin_f, wproj, bproj, w1, b1, w2, b2)


# ------------------------- pure-JAX reference (for self-check) -------------------------
def reference(x, params):
    (scale, wqkv, bqkv, cos_f, sin_f, wproj, bproj, w1, b1, w2, b2) = params
    wattn, battn = wqkv[:, :3 * C], bqkv[:, :3 * C]      # original (unfused) c_attn
    cos = cos_f.reshape(B, T, C)
    sin = sin_f.reshape(B, T, C)

    def rms(v):
        norm = jnp.sqrt(jnp.sum(v * v, axis=-1, keepdims=True))
        return v / (norm / math.sqrt(C) + EPS) * scale

    def rotate_half(t):                                   # interleaved pairs: (x0,x1,..)->(-x1,x0,..)
        t2 = t.reshape(*t.shape[:-1], t.shape[-1] // 2, 2)
        return jnp.stack([-t2[..., 1], t2[..., 0]], axis=-1).reshape(t.shape)

    xn = rms(x)
    qkv = xn @ wattn + battn
    q, k, v = qkv[..., :C], qkv[..., C:2 * C], qkv[..., 2 * C:]
    q = q * cos + rotate_half(q) * sin
    k = k * cos + rotate_half(k) * sin
    qh = q.reshape(B, T, N_HEAD, HD).transpose(0, 2, 1, 3)
    kh = k.reshape(B, T, N_HEAD, HD).transpose(0, 2, 1, 3)
    vh = v.reshape(B, T, N_HEAD, HD).transpose(0, 2, 1, 3)
    att = jnp.einsum('bhqd,bhkd->bhqk', qh, kh) / math.sqrt(HD)
    causal = jnp.tril(jnp.ones((T, T), jnp.float32))
    att = att + causal            # float mask added (SDPA float-mask semantics)
    att = jax.nn.softmax(att, axis=-1)
    y = jnp.einsum('bhqk,bhkd->bhqd', att, vh).transpose(0, 2, 1, 3).reshape(B, T, C)
    out1 = x + (y @ wproj + bproj)
    xn2 = rms(out1)
    ff = jnp.maximum(xn2 @ w1 + b1, 0.0) @ w2 + b2
    return out1 + ff


if __name__ == "__main__":
    key = jax.random.PRNGKey(0)
    x = jax.random.normal(jax.random.fold_in(key, 123), (B, T, C), jnp.float32)
    params = make_params()

    out = rope_rmsnorm_block(x, params)
    out = jax.block_until_ready(out)

    ref = reference(x, params)
    assert out.shape == (B, T, C)
    assert jnp.allclose(out, ref, atol=1e-4, rtol=1e-4), "mismatch vs pure-JAX reference"
    print("KERNEL_OK")
</pallas_src>

<mosaic_0001>
module attributes {stable_mosaic.version = 11 : i64} {
  func.func @block_kernel(%arg0: i32, %arg1: memref<16x32xf32, #tpu.memory_space<vmem>>, %arg2: memref<1x32xf32, #tpu.memory_space<vmem>>, %arg3: memref<32x160xf32, #tpu.memory_space<vmem>>, %arg4: memref<1x160xf32, #tpu.memory_space<vmem>>, %arg5: memref<16x32xf32, #tpu.memory_space<vmem>>, %arg6: memref<16x32xf32, #tpu.memory_space<vmem>>, %arg7: memref<32x32xf32, #tpu.memory_space<vmem>>, %arg8: memref<1x32xf32, #tpu.memory_space<vmem>>, %arg9: memref<32x128xf32, #tpu.memory_space<vmem>>, %arg10: memref<1x128xf32, #tpu.memory_space<vmem>>, %arg11: memref<128x32xf32, #tpu.memory_space<vmem>>, %arg12: memref<1x32xf32, #tpu.memory_space<vmem>>, %arg13: memref<16x32xf32, #tpu.memory_space<vmem>>, %arg14: memref<16x32xf32, #tpu.memory_space<vmem>>) attributes {dimension_semantics = [#tpu.dimension_semantics<arbitrary>], iteration_bounds = array<i64: 1>, scalar_prefetch = 0 : i64, scratch_operands = 1 : i64, tpu.core_type = #tpu.core_type<tc>, window_params = [{pipeline_mode = #tpu.pipeline_mode<synchronous>, transform_indices = @transform_0, window_bounds = array<i64: 16, 32>}, {pipeline_mode = #tpu.pipeline_mode<synchronous>, transform_indices = @transform_1, window_bounds = array<i64: 1, 32>}, {pipeline_mode = #tpu.pipeline_mode<synchronous>, transform_indices = @transform_2, window_bounds = array<i64: 32, 160>}, {pipeline_mode = #tpu.pipeline_mode<synchronous>, transform_indices = @transform_3, window_bounds = array<i64: 1, 160>}, {pipeline_mode = #tpu.pipeline_mode<synchronous>, transform_indices = @transform_4, window_bounds = array<i64: 16, 32>}, {pipeline_mode = #tpu.pipeline_mode<synchronous>, transform_indices = @transform_5, window_bounds = array<i64: 16, 32>}, {pipeline_mode = #tpu.pipeline_mode<synchronous>, transform_indices = @transform_6, window_bounds = array<i64: 32, 32>}, {pipeline_mode = #tpu.pipeline_mode<synchronous>, transform_indices = @transform_7, window_bounds = array<i64: 1, 32>}, {pipeline_mode = #tpu.pipeline_mode<synchronous>, transform_indices = @transform_8, window_bounds = array<i64: 32, 128>}, {pipeline_mode = #tpu.pipeline_mode<synchronous>, transform_indices = @transform_9, window_bounds = array<i64: 1, 128>}, {pipeline_mode = #tpu.pipeline_mode<synchronous>, transform_indices = @transform_10, window_bounds = array<i64: 128, 32>}, {pipeline_mode = #tpu.pipeline_mode<synchronous>, transform_indices = @transform_11, window_bounds = array<i64: 1, 32>}, {pipeline_mode = #tpu.pipeline_mode<synchronous>, transform_indices = @transform_12, window_bounds = array<i64: 16, 32>}]} {
    %c0 = arith.constant 0 : index
    %c0_0 = arith.constant 0 : index
    %0 = vector.load %arg1[%c0, %c0_0] : memref<16x32xf32, #tpu.memory_space<vmem>>, vector<16x32xf32>
    %c0_1 = arith.constant 0 : index
    %c0_2 = arith.constant 0 : index
    %1 = vector.load %arg2[%c0_1, %c0_2] : memref<1x32xf32, #tpu.memory_space<vmem>>, vector<1x32xf32>
    %2 = arith.mulf %0, %0 : vector<16x32xf32>
    %cst = arith.constant dense<0.000000e+00> : vector<16xf32>
    %3 = vector.multi_reduction <add>, %2, %cst [1] : vector<16x32xf32> to vector<16xf32>
    %4 = vector.shape_cast %3 : vector<16xf32> to vector<16x1xf32>
    %5 = math.sqrt %4 : vector<16x1xf32>
    %cst_3 = arith.constant 0.176776692 : f32
    %6 = vector.broadcast %cst_3 : f32 to vector<16x1xf32>
    %7 = arith.mulf %5, %6 : vector<16x1xf32>
    %cst_4 = arith.constant 9.99999993E-9 : f32
    %8 = vector.broadcast %cst_4 : f32 to vector<16x1xf32>
    %9 = arith.addf %7, %8 : vector<16x1xf32>
    %10 = vector.broadcast %9 : vector<16x1xf32> to vector<16x32xf32>
    %11 = arith.divf %0, %10 : vector<16x32xf32>
    %12 = vector.broadcast %1 : vector<1x32xf32> to vector<16x32xf32>
    %13 = arith.mulf %11, %12 : vector<16x32xf32>
    %c0_5 = arith.constant 0 : index
    %c0_6 = arith.constant 0 : index
    %14 = vector.load %arg3[%c0_5, %c0_6] : memref<32x160xf32, #tpu.memory_space<vmem>>, vector<32x160xf32>
    %cst_7 = arith.constant dense<0.000000e+00> : vector<16x160xf32>
    %15 = tpu.matmul %13, %14, %cst_7 {dimension_numbers = #tpu.dot_dimension_numbers<[1], [0], [0], [1], [0, 0, 1, 1], [], []>} : vector<16x32xf32>, vector<32x160xf32>, vector<16x160xf32> -> vector<16x160xf32>
    %c0_8 = arith.constant 0 : index
    %c0_9 = arith.constant 0 : index
    %16 = vector.load %arg4[%c0_8, %c0_9] : memref<1x160xf32, #tpu.memory_space<vmem>>, vector<1x160xf32>
    %17 = vector.broadcast %16 : vector<1x160xf32> to vector<16x160xf32>
    %18 = arith.addf %15, %17 : vector<16x160xf32>
    %c0_10 = arith.constant 0 : index
    %c0_11 = arith.constant 0 : index
    %19 = vector.load %arg5[%c0_10, %c0_11] : memref<16x32xf32, #tpu.memory_space<vmem>>, vector<16x32xf32>
    %c0_12 = arith.constant 0 : index
    %c0_13 = arith.constant 0 : index
    %20 = vector.load %arg6[%c0_12, %c0_13] : memref<16x32xf32, #tpu.memory_space<vmem>>, vector<16x32xf32>
    %21 = vector.extract_strided_slice %18 {offsets = [0, 0], sizes = [16, 32], strides = [1, 1]} : vector<16x160xf32> to vector<16x32xf32>
    %22 = arith.mulf %21, %19 : vector<16x32xf32>
    %23 = vector.extract_strided_slice %18 {offsets = [0, 96], sizes = [16, 32], strides = [1, 1]} : vector<16x160xf32> to vector<16x32xf32>
    %24 = arith.mulf %23, %20 : vector<16x32xf32>
    %25 = arith.addf %22, %24 : vector<16x32xf32>
    %26 = vector.extract_strided_slice %18 {offsets = [0, 32], sizes = [16, 32], strides = [1, 1]} : vector<16x160xf32> to vector<16x32xf32>
    %27 = arith.mulf %26, %19 : vector<16x32xf32>
    %28 = vector.extract_strided_slice %18 {offsets = [0, 128], sizes = [16, 32], strides = [1, 1]} : vector<16x160xf32> to vector<16x32xf32>
    %29 = arith.mulf %28, %20 : vector<16x32xf32>
    %30 = arith.addf %27, %29 : vector<16x32xf32>
    %31 = vector.extract_strided_slice %18 {offsets = [0, 64], sizes = [16, 32], strides = [1, 1]} : vector<16x160xf32> to vector<16x32xf32>
    %32 = tpu.iota {dimensions = array<i32: 0>} : vector<8x8xi32>
    %33 = tpu.iota {dimensions = array<i32: 1>} : vector<8x8xi32>
    %34 = arith.cmpi sge, %32, %33 : vector<8x8xi32>
    %35 = arith.extui %34 : vector<8x8xi1> to vector<8x8xi32>
    %36 = arith.sitofp %35 : vector<8x8xi32> to vector<8x8xf32>
    %37 = vector.extract_strided_slice %25 {offsets = [0, 0], sizes = [8, 8], strides = [1, 1]} : vector<16x32xf32> to vector<8x8xf32>
    %38 = vector.extract_strided_slice %30 {offsets = [0, 0], sizes = [8, 8], strides = [1, 1]} : vector<16x32xf32> to vector<8x8xf32>
    %39 = vector.extract_strided_slice %31 {offsets = [0, 0], sizes = [8, 8], strides = [1, 1]} : vector<16x32xf32> to vector<8x8xf32>
    %cst_14 = arith.constant dense<0.000000e+00> : vector<8x8xf32>
    %40 = tpu.matmul %37, %38, %cst_14 {dimension_numbers = #tpu.dot_dimension_numbers<[1], [1], [0], [0], [0, 0, 1, 0], [], []>} : vector<8x8xf32>, vector<8x8xf32>, vector<8x8xf32> -> vector<8x8xf32>
    %cst_15 = arith.constant 0.353553385 : f32
    %41 = vector.broadcast %cst_15 : f32 to vector<8x8xf32>
    %42 = arith.mulf %40, %41 : vector<8x8xf32>
    %43 = arith.addf %42, %36 : vector<8x8xf32>
    %cst_16 = arith.constant dense<0xFF800000> : vector<8xf32>
    %44 = vector.multi_reduction <maximumf>, %43, %cst_16 [1] : vector<8x8xf32> to vector<8xf32>
    %cst_17 = arith.constant 0xFF800000 : f32
    %45 = vector.broadcast %cst_17 : f32 to vector<8xf32>
    %46 = arith.maximumf %45, %44 : vector<8xf32>
    %47 = vector.shape_cast %46 : vector<8xf32> to vector<8x1xf32>
    %48 = vector.broadcast %47 : vector<8x1xf32> to vector<8x8xf32>
    %49 = arith.subf %43, %48 : vector<8x8xf32>
    %50 = math.exp %49 : vector<8x8xf32>
    %cst_18 = arith.constant dense<0.000000e+00> : vector<8xf32>
    %51 = vector.multi_reduction <add>, %50, %cst_18 [1] : vector<8x8xf32> to vector<8xf32>
    %52 = vector.shape_cast %51 : vector<8xf32> to vector<8x1xf32>
    %53 = vector.broadcast %52 : vector<8x1xf32> to vector<8x8xf32>
    %54 = arith.divf %50, %53 : vector<8x8xf32>
    %cst_19 = arith.constant dense<0.000000e+00> : vector<8x8xf32>
    %55 = tpu.matmul %54, %39, %cst_19 {dimension_numbers = #tpu.dot_dimension_numbers<[1], [0], [0], [1], [0, 0, 1, 1], [], []>} : vector<8x8xf32>, vector<8x8xf32>, vector<8x8xf32> -> vector<8x8xf32>
    %c0_20 = arith.constant 0 : index
    %c0_21 = arith.constant 0 : index
    %56 = vector.load %arg14[%c0_20, %c0_21] : memref<16x32xf32, #tpu.memory_space<vmem>>, vector<8x8xf32>
    tpu.vector_store %arg14[%c0_20, %c0_21], %55 {strides = array<i32>} : memref<16x32xf32, #tpu.memory_space<vmem>>, vector<8x8xf32>,
    %57 = vector.extract_strided_slice %25 {offsets = [0, 8], sizes = [8, 8], strides = [1, 1]} : vector<16x32xf32> to vector<8x8xf32>
    %58 = vector.extract_strided_slice %30 {offsets = [0, 8], sizes = [8, 8], strides = [1, 1]} : vector<16x32xf32> to vector<8x8xf32>
    %59 = vector.extract_strided_slice %31 {offsets = [0, 8], sizes = [8, 8], strides = [1, 1]} : vector<16x32xf32> to vector<8x8xf32>
    %cst_22 = arith.constant dense<0.000000e+00> : vector<8x8xf32>
    %60 = tpu.matmul %57, %58, %cst_22 {dimension_numbers = #tpu.dot_dimension_numbers<[1], [1], [0], [0], [0, 0, 1, 0], [], []>} : vector<8x8xf32>, vector<8x8xf32>, vector<8x8xf32> -> vector<8x8xf32>
    %cst_23 = arith.constant 0.353553385 : f32
    %61 = vector.broadcast %cst_23 : f32 to vector<8x8xf32>
    %62 = arith.mulf %60, %61 : vector<8x8xf32>
    %63 = arith.addf %62, %36 : vector<8x8xf32>
    %cst_24 = arith.constant dense<0xFF800000> : vector<8xf32>
    %64 = vector.multi_reduction <maximumf>, %63, %cst_24 [1] : vector<8x8xf32> to vector<8xf32>
    %cst_25 = arith.constant 0xFF800000 : f32
    %65 = vector.broadcast %cst_25 : f32 to vector<8xf32>
    %66 = arith.maximumf %65, %64 : vector<8xf32>
    %67 = vector.shape_cast %66 : vector<8xf32> to vector<8x1xf32>
    %68 = vector.broadcast %67 : vector<8x1xf32> to vector<8x8xf32>
    %69 = arith.subf %63, %68 : vector<8x8xf32>
    %70 = math.exp %69 : vector<8x8xf32>
    %cst_26 = arith.constant dense<0.000000e+00> : vector<8xf32>
    %71 = vector.multi_reduction <add>, %70, %cst_26 [1] : vector<8x8xf32> to vector<8xf32>
    %72 = vector.shape_cast %71 : vector<8xf32> to vector<8x1xf32>
    %73 = vector.broadcast %72 : vector<8x1xf32> to vector<8x8xf32>
    %74 = arith.divf %70, %73 : vector<8x8xf32>
    %cst_27 = arith.constant dense<0.000000e+00> : vector<8x8xf32>
    %75 = tpu.matmul %74, %59, %cst_27 {dimension_numbers = #tpu.dot_dimension_numbers<[1], [0], [0], [1], [0, 0, 1, 1], [], []>} : vector<8x8xf32>, vector<8x8xf32>, vector<8x8xf32> -> vector<8x8xf32>
    %c0_28 = arith.constant 0 : index
    %c8 = arith.constant 8 : index
    %76 = vector.load %arg14[%c0_28, %c8] : memref<16x32xf32, #tpu.memory_space<vmem>>, vector<8x8xf32>
    tpu.vector_store %arg14[%c0_28, %c8], %75 {strides = array<i32>} : memref<16x32xf32, #tpu.memory_space<vmem>>, vector<8x8xf32>,
    %77 = vector.extract_strided_slice %25 {offsets = [0, 16], sizes = [8, 8], strides = [1, 1]} : vector<16x32xf32> to vector<8x8xf32>
    %78 = vector.extract_strided_slice %30 {offsets = [0, 16], sizes = [8, 8], strides = [1, 1]} : vector<16x32xf32> to vector<8x8xf32>
    %79 = vector.extract_strided_slice %31 {offsets = [0, 16], sizes = [8, 8], strides = [1, 1]} : vector<16x32xf32> to vector<8x8xf32>
    %cst_29 = arith.constant dense<0.000000e+00> : vector<8x8xf32>
    %80 = tpu.matmul %77, %78, %cst_29 {dimension_numbers = #tpu.dot_dimension_numbers<[1], [1], [0], [0], [0, 0, 1, 0], [], []>} : vector<8x8xf32>, vector<8x8xf32>, vector<8x8xf32> -> vector<8x8xf32>
    %cst_30 = arith.constant 0.353553385 : f32
    %81 = vector.broadcast %cst_30 : f32 to vector<8x8xf32>
    %82 = arith.mulf %80, %81 : vector<8x8xf32>
    %83 = arith.addf %82, %36 : vector<8x8xf32>
    %cst_31 = arith.constant dense<0xFF800000> : vector<8xf32>
    %84 = vector.multi_reduction <maximumf>, %83, %cst_31 [1] : vector<8x8xf32> to vector<8xf32>
    %cst_32 = arith.constant 0xFF800000 : f32
    %85 = vector.broadcast %cst_32 : f32 to vector<8xf32>
    %86 = arith.maximumf %85, %84 : vector<8xf32>
    %87 = vector.shape_cast %86 : vector<8xf32> to vector<8x1xf32>
    %88 = vector.broadcast %87 : vector<8x1xf32> to vector<8x8xf32>
    %89 = arith.subf %83, %88 : vector<8x8xf32>
    %90 = math.exp %89 : vector<8x8xf32>
    %cst_33 = arith.constant dense<0.000000e+00> : vector<8xf32>
    %91 = vector.multi_reduction <add>, %90, %cst_33 [1] : vector<8x8xf32> to vector<8xf32>
    %92 = vector.shape_cast %91 : vector<8xf32> to vector<8x1xf32>
    %93 = vector.broadcast %92 : vector<8x1xf32> to vector<8x8xf32>
    %94 = arith.divf %90, %93 : vector<8x8xf32>
    %cst_34 = arith.constant dense<0.000000e+00> : vector<8x8xf32>
    %95 = tpu.matmul %94, %79, %cst_34 {dimension_numbers = #tpu.dot_dimension_numbers<[1], [0], [0], [1], [0, 0, 1, 1], [], []>} : vector<8x8xf32>, vector<8x8xf32>, vector<8x8xf32> -> vector<8x8xf32>
    %c0_35 = arith.constant 0 : index
    %c16 = arith.constant 16 : index
    %96 = vector.load %arg14[%c0_35, %c16] : memref<16x32xf32, #tpu.memory_space<vmem>>, vector<8x8xf32>
    tpu.vector_store %arg14[%c0_35, %c16], %95 {strides = array<i32>} : memref<16x32xf32, #tpu.memory_space<vmem>>, vector<8x8xf32>,
    %97 = vector.extract_strided_slice %25 {offsets = [0, 24], sizes = [8, 8], strides = [1, 1]} : vector<16x32xf32> to vector<8x8xf32>
    %98 = vector.extract_strided_slice %30 {offsets = [0, 24], sizes = [8, 8], strides = [1, 1]} : vector<16x32xf32> to vector<8x8xf32>
    %99 = vector.extract_strided_slice %31 {offsets = [0, 24], sizes = [8, 8], strides = [1, 1]} : vector<16x32xf32> to vector<8x8xf32>
    %cst_36 = arith.constant dense<0.000000e+00> : vector<8x8xf32>
    %100 = tpu.matmul %97, %98, %cst_36 {dimension_numbers = #tpu.dot_dimension_numbers<[1], [1], [0], [0], [0, 0, 1, 0], [], []>} : vector<8x8xf32>, vector<8x8xf32>, vector<8x8xf32> -> vector<8x8xf32>
    %cst_37 = arith.constant 0.353553385 : f32
    %101 = vector.broadcast %cst_37 : f32 to vector<8x8xf32>
    %102 = arith.mulf %100, %101 : vector<8x8xf32>
    %103 = arith.addf %102, %36 : vector<8x8xf32>
    %cst_38 = arith.constant dense<0xFF800000> : vector<8xf32>
    %104 = vector.multi_reduction <maximumf>, %103, %cst_38 [1] : vector<8x8xf32> to vector<8xf32>
    %cst_39 = arith.constant 0xFF800000 : f32
    %105 = vector.broadcast %cst_39 : f32 to vector<8xf32>
    %106 = arith.maximumf %105, %104 : vector<8xf32>
    %107 = vector.shape_cast %106 : vector<8xf32> to vector<8x1xf32>
    %108 = vector.broadcast %107 : vector<8x1xf32> to vector<8x8xf32>
    %109 = arith.subf %103, %108 : vector<8x8xf32>
    %110 = math.exp %109 : vector<8x8xf32>
    %cst_40 = arith.constant dense<0.000000e+00> : vector<8xf32>
    %111 = vector.multi_reduction <add>, %110, %cst_40 [1] : vector<8x8xf32> to vector<8xf32>
    %112 = vector.shape_cast %111 : vector<8xf32> to vector<8x1xf32>
    %113 = vector.broadcast %112 : vector<8x1xf32> to vector<8x8xf32>
    %114 = arith.divf %110, %113 : vector<8x8xf32>
    %cst_41 = arith.constant dense<0.000000e+00> : vector<8x8xf32>
    %115 = tpu.matmul %114, %99, %cst_41 {dimension_numbers = #tpu.dot_dimension_numbers<[1], [0], [0], [1], [0, 0, 1, 1], [], []>} : vector<8x8xf32>, vector<8x8xf32>, vector<8x8xf32> -> vector<8x8xf32>
    %c0_42 = arith.constant 0 : index
    %c24 = arith.constant 24 : index
    %116 = vector.load %arg14[%c0_42, %c24] : memref<16x32xf32, #tpu.memory_space<vmem>>, vector<8x8xf32>
    tpu.vector_store %arg14[%c0_42, %c24], %115 {strides = array<i32>} : memref<16x32xf32, #tpu.memory_space<vmem>>, vector<8x8xf32>,
    %117 = vector.extract_strided_slice %25 {offsets = [8, 0], sizes = [8, 8], strides = [1, 1]} : vector<16x32xf32> to vector<8x8xf32>
    %118 = vector.extract_strided_slice %30 {offsets = [8, 0], sizes = [8, 8], strides = [1, 1]} : vector<16x32xf32> to vector<8x8xf32>
    %119 = vector.extract_strided_slice %31 {offsets = [8, 0], sizes = [8, 8], strides = [1, 1]} : vector<16x32xf32> to vector<8x8xf32>
    %cst_43 = arith.constant dense<0.000000e+00> : vector<8x8xf32>
    %120 = tpu.matmul %117, %118, %cst_43 {dimension_numbers = #tpu.dot_dimension_numbers<[1], [1], [0], [0], [0, 0, 1, 0], [], []>} : vector<8x8xf32>, vector<8x8xf32>, vector<8x8xf32> -> vector<8x8xf32>
    %cst_44 = arith.constant 0.353553385 : f32
    %121 = vector.broadcast %cst_44 : f32 to vector<8x8xf32>
    %122 = arith.mulf %120, %121 : vector<8x8xf32>
    %123 = arith.addf %122, %36 : vector<8x8xf32>
    %cst_45 = arith.constant dense<0xFF800000> : vector<8xf32>
    %124 = vector.multi_reduction <maximumf>, %123, %cst_45 [1] : vector<8x8xf32> to vector<8xf32>
    %cst_46 = arith.constant 0xFF800000 : f32
    %125 = vector.broadcast %cst_46 : f32 to vector<8xf32>
    %126 = arith.maximumf %125, %124 : vector<8xf32>
    %127 = vector.shape_cast %126 : vector<8xf32> to vector<8x1xf32>
    %128 = vector.broadcast %127 : vector<8x1xf32> to vector<8x8xf32>
    %129 = arith.subf %123, %128 : vector<8x8xf32>
    %130 = math.exp %129 : vector<8x8xf32>
    %cst_47 = arith.constant dense<0.000000e+00> : vector<8xf32>
    %131 = vector.multi_reduction <add>, %130, %cst_47 [1] : vector<8x8xf32> to vector<8xf32>
    %132 = vector.shape_cast %131 : vector<8xf32> to vector<8x1xf32>
    %133 = vector.broadcast %132 : vector<8x1xf32> to vector<8x8xf32>
    %134 = arith.divf %130, %133 : vector<8x8xf32>
    %cst_48 = arith.constant dense<0.000000e+00> : vector<8x8xf32>
    %135 = tpu.matmul %134, %119, %cst_48 {dimension_numbers = #tpu.dot_dimension_numbers<[1], [0], [0], [1], [0, 0, 1, 1], [], []>} : vector<8x8xf32>, vector<8x8xf32>, vector<8x8xf32> -> vector<8x8xf32>
    %c8_49 = arith.constant 8 : index
    %c0_50 = arith.constant 0 : index
    %136 = vector.load %arg14[%c8_49, %c0_50] : memref<16x32xf32, #tpu.memory_space<vmem>>, vector<8x8xf32>
    tpu.vector_store %arg14[%c8_49, %c0_50], %135 {strides = array<i32>} : memref<16x32xf32, #tpu.memory_space<vmem>>, vector<8x8xf32>,
    %137 = vector.extract_strided_slice %25 {offsets = [8, 8], sizes = [8, 8], strides = [1, 1]} : vector<16x32xf32> to vector<8x8xf32>
    %138 = vector.extract_strided_slice %30 {offsets = [8, 8], sizes = [8, 8], strides = [1, 1]} : vector<16x32xf32> to vector<8x8xf32>
    %139 = vector.extract_strided_slice %31 {offsets = [8, 8], sizes = [8, 8], strides = [1, 1]} : vector<16x32xf32> to vector<8x8xf32>
    %cst_51 = arith.constant dense<0.000000e+00> : vector<8x8xf32>
    %140 = tpu.matmul %137, %138, %cst_51 {dimension_numbers = #tpu.dot_dimension_numbers<[1], [1], [0], [0], [0, 0, 1, 0], [], []>} : vector<8x8xf32>, vector<8x8xf32>, vector<8x8xf32> -> vector<8x8xf32>
    %cst_52 = arith.constant 0.353553385 : f32
    %141 = vector.broadcast %cst_52 : f32 to vector<8x8xf32>
    %142 = arith.mulf %140, %141 : vector<8x8xf32>
    %143 = arith.addf %142, %36 : vector<8x8xf32>
    %cst_53 = arith.constant dense<0xFF800000> : vector<8xf32>
    %144 = vector.multi_reduction <maximumf>, %143, %cst_53 [1] : vector<8x8xf32> to vector<8xf32>
    %cst_54 = arith.constant 0xFF800000 : f32
    %145 = vector.broadcast %cst_54 : f32 to vector<8xf32>
    %146 = arith.maximumf %145, %144 : vector<8xf32>
    %147 = vector.shape_cast %146 : vector<8xf32> to vector<8x1xf32>
    %148 = vector.broadcast %147 : vector<8x1xf32> to vector<8x8xf32>
    %149 = arith.subf %143, %148 : vector<8x8xf32>
    %150 = math.exp %149 : vector<8x8xf32>
    %cst_55 = arith.constant dense<0.000000e+00> : vector<8xf32>
    %151 = vector.multi_reduction <add>, %150, %cst_55 [1] : vector<8x8xf32> to vector<8xf32>
    %152 = vector.shape_cast %151 : vector<8xf32> to vector<8x1xf32>
    %153 = vector.broadcast %152 : vector<8x1xf32> to vector<8x8xf32>
    %154 = arith.divf %150, %153 : vector<8x8xf32>
    %cst_56 = arith.constant dense<0.000000e+00> : vector<8x8xf32>
    %155 = tpu.matmul %154, %139, %cst_56 {dimension_numbers = #tpu.dot_dimension_numbers<[1], [0], [0], [1], [0, 0, 1, 1], [], []>} : vector<8x8xf32>, vector<8x8xf32>, vector<8x8xf32> -> vector<8x8xf32>
    %c8_57 = arith.constant 8 : index
    %c8_58 = arith.constant 8 : index
    %156 = vector.load %arg14[%c8_57, %c8_58] : memref<16x32xf32, #tpu.memory_space<vmem>>, vector<8x8xf32>
    tpu.vector_store %arg14[%c8_57, %c8_58], %155 {strides = array<i32>} : memref<16x32xf32, #tpu.memory_space<vmem>>, vector<8x8xf32>,
    %157 = vector.extract_strided_slice %25 {offsets = [8, 16], sizes = [8, 8], strides = [1, 1]} : vector<16x32xf32> to vector<8x8xf32>
    %158 = vector.extract_strided_slice %30 {offsets = [8, 16], sizes = [8, 8], strides = [1, 1]} : vector<16x32xf32> to vector<8x8xf32>
    %159 = vector.extract_strided_slice %31 {offsets = [8, 16], sizes = [8, 8], strides = [1, 1]} : vector<16x32xf32> to vector<8x8xf32>
    %cst_59 = arith.constant dense<0.000000e+00> : vector<8x8xf32>
    %160 = tpu.matmul %157, %158, %cst_59 {dimension_numbers = #tpu.dot_dimension_numbers<[1], [1], [0], [0], [0, 0, 1, 0], [], []>} : vector<8x8xf32>, vector<8x8xf32>, vector<8x8xf32> -> vector<8x8xf32>
    %cst_60 = arith.constant 0.353553385 : f32
    %161 = vector.broadcast %cst_60 : f32 to vector<8x8xf32>
    %162 = arith.mulf %160, %161 : vector<8x8xf32>
    %163 = arith.addf %162, %36 : vector<8x8xf32>
    %cst_61 = arith.constant dense<0xFF800000> : vector<8xf32>
    %164 = vector.multi_reduction <maximumf>, %163, %cst_61 [1] : vector<8x8xf32> to vector<8xf32>
    %cst_62 = arith.constant 0xFF800000 : f32
    %165 = vector.broadcast %cst_62 : f32 to vector<8xf32>
    %166 = arith.maximumf %165, %164 : vector<8xf32>
    %167 = vector.shape_cast %166 : vector<8xf32> to vector<8x1xf32>
    %168 = vector.broadcast %167 : vector<8x1xf32> to vector<8x8xf32>
    %169 = arith.subf %163, %168 : vector<8x8xf32>
    %170 = math.exp %169 : vector<8x8xf32>
    %cst_63 = arith.constant dense<0.000000e+00> : vector<8xf32>
    %171 = vector.multi_reduction <add>, %170, %cst_63 [1] : vector<8x8xf32> to vector<8xf32>
    %172 = vector.shape_cast %171 : vector<8xf32> to vector<8x1xf32>
    %173 = vector.broadcast %172 : vector<8x1xf32> to vector<8x8xf32>
    %174 = arith.divf %170, %173 : vector<8x8xf32>
    %cst_64 = arith.constant dense<0.000000e+00> : vector<8x8xf32>
    %175 = tpu.matmul %174, %159, %cst_64 {dimension_numbers = #tpu.dot_dimension_numbers<[1], [0], [0], [1], [0, 0, 1, 1], [], []>} : vector<8x8xf32>, vector<8x8xf32>, vector<8x8xf32> -> vector<8x8xf32>
    %c8_65 = arith.constant 8 : index
    %c16_66 = arith.constant 16 : index
    %176 = vector.load %arg14[%c8_65, %c16_66] : memref<16x32xf32, #tpu.memory_space<vmem>>, vector<8x8xf32>
    tpu.vector_store %arg14[%c8_65, %c16_66], %175 {strides = array<i32>} : memref<16x32xf32, #tpu.memory_space<vmem>>, vector<8x8xf32>,
    %177 = vector.extract_strided_slice %25 {offsets = [8, 24], sizes = [8, 8], strides = [1, 1]} : vector<16x32xf32> to vector<8x8xf32>
    %178 = vector.extract_strided_slice %30 {offsets = [8, 24], sizes = [8, 8], strides = [1, 1]} : vector<16x32xf32> to vector<8x8xf32>
    %179 = vector.extract_strided_slice %31 {offsets = [8, 24], sizes = [8, 8], strides = [1, 1]} : vector<16x32xf32> to vector<8x8xf32>
    %cst_67 = arith.constant dense<0.000000e+00> : vector<8x8xf32>
    %180 = tpu.matmul %177, %178, %cst_67 {dimension_numbers = #tpu.dot_dimension_numbers<[1], [1], [0], [0], [0, 0, 1, 0], [], []>} : vector<8x8xf32>, vector<8x8xf32>, vector<8x8xf32> -> vector<8x8xf32>
    %cst_68 = arith.constant 0.353553385 : f32
    %181 = vector.broadcast %cst_68 : f32 to vector<8x8xf32>
    %182 = arith.mulf %180, %181 : vector<8x8xf32>
    %183 = arith.addf %182, %36 : vector<8x8xf32>
    %cst_69 = arith.constant dense<0xFF800000> : vector<8xf32>
    %184 = vector.multi_reduction <maximumf>, %183, %cst_69 [1] : vector<8x8xf32> to vector<8xf32>
    %cst_70 = arith.constant 0xFF800000 : f32
    %185 = vector.broadcast %cst_70 : f32 to vector<8xf32>
    %186 = arith.maximumf %185, %184 : vector<8xf32>
    %187 = vector.shape_cast %186 : vector<8xf32> to vector<8x1xf32>
    %188 = vector.broadcast %187 : vector<8x1xf32> to vector<8x8xf32>
    %189 = arith.subf %183, %188 : vector<8x8xf32>
    %190 = math.exp %189 : vector<8x8xf32>
    %cst_71 = arith.constant dense<0.000000e+00> : vector<8xf32>
    %191 = vector.multi_reduction <add>, %190, %cst_71 [1] : vector<8x8xf32> to vector<8xf32>
    %192 = vector.shape_cast %191 : vector<8xf32> to vector<8x1xf32>
    %193 = vector.broadcast %192 : vector<8x1xf32> to vector<8x8xf32>
    %194 = arith.divf %190, %193 : vector<8x8xf32>
    %cst_72 = arith.constant dense<0.000000e+00> : vector<8x8xf32>
    %195 = tpu.matmul %194, %179, %cst_72 {dimension_numbers = #tpu.dot_dimension_numbers<[1], [0], [0], [1], [0, 0, 1, 1], [], []>} : vector<8x8xf32>, vector<8x8xf32>, vector<8x8xf32> -> vector<8x8xf32>
    %c8_73 = arith.constant 8 : index
    %c24_74 = arith.constant 24 : index
    %196 = vector.load %arg14[%c8_73, %c24_74] : memref<16x32xf32, #tpu.memory_space<vmem>>, vector<8x8xf32>
    tpu.vector_store %arg14[%c8_73, %c24_74], %195 {strides = array<i32>} : memref<16x32xf32, #tpu.memory_space<vmem>>, vector<8x8xf32>,
    %c0_75 = arith.constant 0 : index
    %c0_76 = arith.constant 0 : index
    %197 = vector.load %arg14[%c0_75, %c0_76] : memref<16x32xf32, #tpu.memory_space<vmem>>, vector<16x32xf32>
    %c0_77 = arith.constant 0 : index
    %c0_78 = arith.constant 0 : index
    %198 = vector.load %arg7[%c0_77, %c0_78] : memref<32x32xf32, #tpu.memory_space<vmem>>, vector<32x32xf32>
    %cst_79 = arith.constant dense<0.000000e+00> : vector<16x32xf32>
    %199 = tpu.matmul %197, %198, %cst_79 {dimension_numbers = #tpu.dot_dimension_numbers<[1], [0], [0], [1], [0, 0, 1, 1], [], []>} : vector<16x32xf32>, vector<32x32xf32>, vector<16x32xf32> -> vector<16x32xf32>
    %c0_80 = arith.constant 0 : index
    %c0_81 = arith.constant 0 : index
    %200 = vector.load %arg8[%c0_80, %c0_81] : memref<1x32xf32, #tpu.memory_space<vmem>>, vector<1x32xf32>
    %201 = vector.broadcast %200 : vector<1x32xf32> to vector<16x32xf32>
    %202 = arith.addf %199, %201 : vector<16x32xf32>
    %203 = arith.addf %0, %202 : vector<16x32xf32>
    %204 = arith.mulf %203, %203 : vector<16x32xf32>
    %cst_82 = arith.constant dense<0.000000e+00> : vector<16xf32>
    %205 = vector.multi_reduction <add>, %204, %cst_82 [1] : vector<16x32xf32> to vector<16xf32>
    %206 = vector.shape_cast %205 : vector<16xf32> to vector<16x1xf32>
    %207 = math.sqrt %206 : vector<16x1xf32>
    %cst_83 = arith.constant 0.176776692 : f32
    %208 = vector.broadcast %cst_83 : f32 to vector<16x1xf32>
    %209 = arith.mulf %207, %208 : vector<16x1xf32>
    %cst_84 = arith.constant 9.99999993E-9 : f32
    %210 = vector.broadcast %cst_84 : f32 to vector<16x1xf32>
    %211 = arith.addf %209, %210 : vector<16x1xf32>
    %212 = vector.broadcast %211 : vector<16x1xf32> to vector<16x32xf32>
    %213 = arith.divf %203, %212 : vector<16x32xf32>
    %214 = vector.broadcast %1 : vector<1x32xf32> to vector<16x32xf32>
    %215 = arith.mulf %213, %214 : vector<16x32xf32>
    %c0_85 = arith.constant 0 : index
    %c0_86 = arith.constant 0 : index
    %216 = vector.load %arg9[%c0_85, %c0_86] : memref<32x128xf32, #tpu.memory_space<vmem>>, vector<32x128xf32>
    %cst_87 = arith.constant dense<0.000000e+00> : vector<16x128xf32>
    %217 = tpu.matmul %215, %216, %cst_87 {dimension_numbers = #tpu.dot_dimension_numbers<[1], [0], [0], [1], [0, 0, 1, 1], [], []>} : vector<16x32xf32>, vector<32x128xf32>, vector<16x128xf32> -> vector<16x128xf32>
    %c0_88 = arith.constant 0 : index
    %c0_89 = arith.constant 0 : index
    %218 = vector.load %arg10[%c0_88, %c0_89] : memref<1x128xf32, #tpu.memory_space<vmem>>, vector<1x128xf32>
    %219 = vector.broadcast %218 : vector<1x128xf32> to vector<16x128xf32>
    %220 = arith.addf %217, %219 : vector<16x128xf32>
    %cst_90 = arith.constant 0.000000e+00 : f32
    %221 = vector.broadcast %cst_90 : f32 to vector<16x128xf32>
    %222 = arith.maximumf %220, %221 : vector<16x128xf32>
    %c0_91 = arith.constant 0 : index
    %c0_92 = arith.constant 0 : index
    %223 = vector.load %arg11[%c0_91, %c0_92] : memref<128x32xf32, #tpu.memory_space<vmem>>, vector<128x32xf32>
    %cst_93 = arith.constant dense<0.000000e+00> : vector<16x32xf32>
    %224 = tpu.matmul %222, %223, %cst_93 {dimension_numbers = #tpu.dot_dimension_numbers<[1], [0], [0], [1], [0, 0, 1, 1], [], []>} : vector<16x128xf32>, vector<128x32xf32>, vector<16x32xf32> -> vector<16x32xf32>
    %c0_94 = arith.constant 0 : index
    %c0_95 = arith.constant 0 : index
    %225 = vector.load %arg12[%c0_94, %c0_95] : memref<1x32xf32, #tpu.memory_space<vmem>>, vector<1x32xf32>
    %226 = vector.broadcast %225 : vector<1x32xf32> to vector<16x32xf32>
    %227 = arith.addf %224, %226 : vector<16x32xf32>
    %228 = arith.addf %203, %227 : vector<16x32xf32>
    %c0_96 = arith.constant 0 : index
    %c0_97 = arith.constant 0 : index
    %229 = vector.load %arg13[%c0_96, %c0_97] : memref<16x32xf32, #tpu.memory_space<vmem>>, vector<16x32xf32>
    tpu.vector_store %arg13[%c0_96, %c0_97], %228 {strides = array<i32>} : memref<16x32xf32, #tpu.memory_space<vmem>>, vector<16x32xf32>,
    return
  }
  func.func @transform_0(%arg0: i32) -> (i32, i32) {
    %c0_i32 = arith.constant 0 : i32
    %c0_i32_0 = arith.constant 0 : i32
    %c0_i32_1 = arith.constant 0 : i32
    return %c0_i32, %c0_i32_0 : i32, i32
  }
  func.func @transform_1(%arg0: i32) -> (i32, i32) {
    %c0_i32 = arith.constant 0 : i32
    %c0_i32_0 = arith.constant 0 : i32
    %c0_i32_1 = arith.constant 0 : i32
    return %c0_i32, %c0_i32_0 : i32, i32
  }
  func.func @transform_2(%arg0: i32) -> (i32, i32) {
    %c0_i32 = arith.constant 0 : i32
    %c0_i32_0 = arith.constant 0 : i32
    %c0_i32_1 = arith.constant 0 : i32
    return %c0_i32, %c0_i32_0 : i32, i32
  }
  func.func @transform_3(%arg0: i32) -> (i32, i32) {
    %c0_i32 = arith.constant 0 : i32
    %c0_i32_0 = arith.constant 0 : i32
    %c0_i32_1 = arith.constant 0 : i32
    return %c0_i32, %c0_i32_0 : i32, i32
  }
  func.func @transform_4(%arg0: i32) -> (i32, i32) {
    %c0_i32 = arith.constant 0 : i32
    %c0_i32_0 = arith.constant 0 : i32
    %c0_i32_1 = arith.constant 0 : i32
    return %c0_i32, %c0_i32_0 : i32, i32
  }
  func.func @transform_5(%arg0: i32) -> (i32, i32) {
    %c0_i32 = arith.constant 0 : i32
    %c0_i32_0 = arith.constant 0 : i32
    %c0_i32_1 = arith.constant 0 : i32
    return %c0_i32, %c0_i32_0 : i32, i32
  }
  func.func @transform_6(%arg0: i32) -> (i32, i32) {
    %c0_i32 = arith.constant 0 : i32
    %c0_i32_0 = arith.constant 0 : i32
    %c0_i32_1 = arith.constant 0 : i32
    return %c0_i32, %c0_i32_0 : i32, i32
  }
  func.func @transform_7(%arg0: i32) -> (i32, i32) {
    %c0_i32 = arith.constant 0 : i32
    %c0_i32_0 = arith.constant 0 : i32
    %c0_i32_1 = arith.constant 0 : i32
    return %c0_i32, %c0_i32_0 : i32, i32
  }
  func.func @transform_8(%arg0: i32) -> (i32, i32) {
    %c0_i32 = arith.constant 0 : i32
    %c0_i32_0 = arith.constant 0 : i32
    %c0_i32_1 = arith.constant 0 : i32
    return %c0_i32, %c0_i32_0 : i32, i32
  }
  func.func @transform_9(%arg0: i32) -> (i32, i32) {
    %c0_i32 = arith.constant 0 : i32
    %c0_i32_0 = arith.constant 0 : i32
    %c0_i32_1 = arith.constant 0 : i32
    return %c0_i32, %c0_i32_0 : i32, i32
  }
  func.func @transform_10(%arg0: i32) -> (i32, i32) {
    %c0_i32 = arith.constant 0 : i32
    %c0_i32_0 = arith.constant 0 : i32
    %c0_i32_1 = arith.constant 0 : i32
    return %c0_i32, %c0_i32_0 : i32, i32
  }
  func.func @transform_11(%arg0: i32) -> (i32, i32) {
    %c0_i32 = arith.constant 0 : i32
    %c0_i32_0 = arith.constant 0 : i32
    %c0_i32_1 = arith.constant 0 : i32
    return %c0_i32, %c0_i32_0 : i32, i32
  }
  func.func @transform_12(%arg0: i32) -> (i32, i32) {
    %c0_i32 = arith.constant 0 : i32
    %c0_i32_0 = arith.constant 0 : i32
    %c0_i32_1 = arith.constant 0 : i32
    return %c0_i32, %c0_i32_0 : i32, i32
  }
}

</mosaic_0001>

<bundles_post_ra>
// kernel: tpu_custom_call.1
= control target key start
LH: loop header
LB: loop body
LE: loop exit
PB: predicated region body
PF: predicated region fallthrough
CT: control target
= control target key end

     0   :  { %17 = vsyncpa [#allocation4], 0  ;;  %s2821_s0 = inlined_call_operand.vmem [shape: f32[16,32], index: 0, kind: input, shape index: {}]   ;;  %s2822_s1 = inlined_call_operand.vmem [shape: f32[1,32], index: 1, kind: input, shape index: {}]   ;;  %s2823_s2 = inlined_call_operand.vmem [shape: f32[32,160], index: 2, kind: input, shape index: {}]   ;;  %s2824_s3 = inlined_call_operand.vmem [shape: f32[1,160], index: 3, kind: input, shape index: {}]   ;;  %s2825_s4 = inlined_call_operand.vmem [shape: f32[16,32], index: 4, kind: input, shape index: {}]   ;;  %s2826_s5 = inlined_call_operand.hbm [shape: f32[16,32], index: 5, kind: input, shape index: {}]   ;;  %s2827_s6 = inlined_call_operand.vmem [shape: f32[32,32], index: 6, kind: input, shape index: {}]   ;;  %s2828_s7 = inlined_call_operand.vmem [shape: f32[1,32], index: 7, kind: input, shape index: {}]   ;;  %s2829_s8 = inlined_call_operand.vmem [shape: f32[32,128], index: 8, kind: input, shape index: {}]   ;;  %s2830_s9 = inlined_call_operand.vmem [shape: f32[1,128], index: 9, kind: input, shape index: {}]   ;;  %s2831_s10 = inlined_call_operand.vmem [shape: f32[128,32], index: 10, kind: input, shape index: {}]   ;;  %s2832_s11 = inlined_call_operand.vmem [shape: f32[1,32], index: 11, kind: input, shape index: {}]   ;;  %s2833_s12 = inlined_call_operand.hbm [shape: f32[16,32], index: 12, kind: output, shape index: {}]  }
   0x1   :  { %18 = vsyncpa [#allocation5], 0  ;;  %s2377_s21 = smov [#allocation3]   ;;  %s2329_s25 = scalar_lea.hbm %s2826_s5, 256 }
   0x2   :  { %s34_s22 = sshll.u32 %s2377_s21, 4  ;;  %p2330_p0 = scmp.ne.s32.totalorder %s2826_s5, %s2329_s25  ;;  %s35_s22 = int_to_ptr.vmem [resolvable:$true] %s34_s22 }
   0x3   :  { %p2333_p1 = scmp.lt.u32.totalorder %s2329_s25, %s2826_s5 }
   0x5   :  { %p2335_p2 = pnand %p2333_p1, %p2330_p0 }
   0x7   :  { %2338 = shalt.err (!%p2335_p2)
}
   0x8   :  { %s2339_s30 = scalar_lea.vmem %s35_s22, 256  ;;  %p2344_p4 = scmp.lt.s32.totalorder %s35_s22, %s35_s22 }
   0x9   :  { %p2340_p3 = scmp.ne.s32.totalorder %s35_s22, %s2339_s30  ;;  %p2345_p5 = scmp.lt.s32.totalorder %s2339_s30, %s2339_s30 }
   0xb   :  { %p2346_p6 = por %p2345_p5, %p2344_p4 }
   0xd   :  { %p2347_p7 = pnand %p2346_p6, %p2340_p3 }
   0xf   :  { %2350 = shalt.err (!%p2347_p7)
}
  0x10   :  { %s2378_s13 = smov 128   ;;  %s2379_s14 = smov 8  }
  0x11   :  { %40 = dma.hbm_to_vmem [thread:$0]  %s2826_s5, 256, %s35_s22, [#allocation4], %s2378_s13, %s2378_s13, %s2379_s14  }
  0x12   :  { %2373 = dma.done.wait [#allocation4], 256  }
  0x13   :  { %2374 = vsyncadd [#allocation4], 4294967040  ;;  %v2480_v0 = vld [vmem:[%s2821_s0] sm:$0xff]  ;;  %vm61_vm0 = vcmask 261120   ;;  %v99_v3 = vld [vmem:[%s2823_s2 + $0x8] sm:$0xff]  ;;  %v2380_v10 = vmov 0.0   ;;  %v108_v30 = vlaneseq }
  0x14   :  { %v59_v1 = vmul.f32 %v2480_v0, %v2480_v0  ;;  %v101_v4 = vld [vmem:[%s2823_s2 + $0x18] sm:$0xff]  ;;  %v98_v5 = vld [vmem:[%s2823_s2] sm:$0xff]  ;;  %v100_v7 = vld [vmem:[%s2823_s2 + $0x10] sm:$0xff]  ;;  %188 = vmatprep.mubr.f32.mxu0 %v2380_v10  ;;  %2073 = vmatprep.subr.mxu1 %v2380_v10  ;;  %s2381_s20 = smov 96   ;;  %s2382_s21 = smov 32   ;;  %vm2383_vm3 = vmmov 0  }
  0x15   :  { %v2205_v6 = vpack.c.bf16 %v101_v4, %v99_v3  ;;  %v103_v8 = vld [vmem:[%s2823_s2 + $0x28] sm:$0xff]  ;;  %v105_v9 = vld [vmem:[%s2823_s2 + $0x38] sm:$0xff]  ;;  %v2207_v11 = vpack.c.bf16 %v100_v7, %v98_v5  ;;  %v102_v13 = vld [vmem:[%s2823_s2 + $0x20] sm:$0xff]  ;;  %v2529_v31 = vshrl.u32 %v108_v30, 7  ;;  %2075 = vmatprep.mubr.msk.f32.mxu1 %vm2383_vm3, %v2380_v10  ;;  %vm259_vm6 = vcmask 64512   ;;  %s2385_s25 = smov 88  }
  0x16   :  { %v62_v2 = vsel %vm61_vm0, %v59_v1, 0.0  ;;  %v2209_v12 = vpack.c.bf16 %v105_v9, %v103_v8  ;;  %v104_v14 = vld [vmem:[%s2823_s2 + $0x30] sm:$0xff]  ;;  %v2515_v17 = vld [vmem:[%s2825_s4] sm:$0xff]  ;;  %v2542_v39 = vld [vmem:[%s2821_s0 + $0x8] sm:$0xff]  ;;  %s2386_s26 = smov 120   ;;  %s2387_s27 = smov 80  }
  0x17   :  { %63 = vadd.xlane.f32.xlu0 %v62_v2  ;;  %2206 = vmatprep.subr.bf16.mxu0 %v2205_v6  ;;  %v2211_v15 = vpack.c.bf16 %v104_v14, %v102_v13  ;;  %v203_v16 = vld [vmem:[#allocation3] sm:$0xff]  ;;  %v2523_v27 = vld [vmem:[%s2822_s1] ss:$0 sm:$0xff]  ;;  %v114_v32 = vsub.s32 1, %v2529_v31  ;;  %v60_v40 = vmul.f32 %v2542_v39, %v2542_v39  ;;  %v110_v42 = vsub.s32 0, %v2529_v31  ;;  %v204_v47 = vld [vmem:[#allocation3 + $0x8] sm:$0xff] }
  0x18   :  { %2208 = vmatpush1.bf16.msra.mxu0 %v2207_v11  ;;  %209 = vrot.lane.b32.xlu1 %v203_v16, %s2381_s20  ;;  %v106_v33 = vld [vmem:[%s2824_s3] sm:$0x3]  ;;  %v2556_v48 = vld [vmem:[%s2825_s4 + $0x8] sm:$0xff]  ;;  %v252_v11 = vand.u32 127, %v108_v30  ;;  %s2384_s4 = smov 64   ;;  %s2388_s28 = smov 112  }
  0x19   :  { %2210 = vmatprep.subr.bf16.mxu0 %v2209_v12  ;;  %v2535_v34 = vrot.slane %v106_v33, %v114_v32  ;;  %v65_v41 = vsel %vm61_vm0, %v60_v40, 0.0  ;;  %v111_v43 = vrot.slane %v106_v33, %v110_v42  ;;  %s2389_s29 = smov 104   ;;  %s2390_s30 = smov 72   ;;  %vm597_vm8 = vcmask 130112  }
  0x1a   :  { %vm253_vm7 = vcmp.ge.s32.totalorder %v2529_v31, %v252_v11  ;;  %s2391_s15 = smov 56   ;;  %s2392_s16 = smov 40   ;;  %vm770_vm9 = vcmask 195712   ;;  %vm943_vm10 = vcmask 261312  }
  0x1b   :  { %v2585_v12 = vsel %vm253_vm7, 1.0, %v2380_v10  ;;  %s2393_s17 = smov 48   ;;  %s2394_s18 = smov 16  }
  0x1c   :  { %2212 = vmatpush1.bf16.msra.mxu0 %v2211_v15  ;;  %s2395_s19 = smov 24  }
  0x1d   :  { %2068 = vmatprep.subr.mxu0 %v2380_v10 }
  0x2d   :  { %229 = vrot.lane.b32.xlu0 %v2515_v17, %s2382_s21 }
  0x8a   :  { %v210_v45 = vpop.permute.xlu1 %209 }
  0xa4   :  { %v64_v18 = vpop.xlane.xlu0 %63 }
  0xa5   :  { %2281 = vrsqrt.f32 %v64_v18  ;;  %vm70_vm1 = vcmp.eq.f32.partialorder %v64_v18, inf  ;;  %v73_v21 = vand.u32 2147483648, %v64_v18  ;;  %vm72_vm2 = vcmp.eq.f32.partialorder %v64_v18, 0.0 }
  0xa8   :  { %v230_v46 = vpop.permute.xlu0 %229 }
  0xaf   :  { %v2282_v19 = vpop.eup %2281 }
  0xb0   :  { %v69_v20 = vmul.f32 %v2282_v19, %v64_v18 }
  0xb2   :  { %v71_v22 = vsel %vm70_vm1, %v64_v18, %v69_v20 }
  0xb3   :  { %v74_v23 = vsel %vm72_vm2, %v73_v21, %v71_v22 }
  0xb4   :  { %v82_v24 = vmul.f32 0.17677669, %v74_v23 }
  0xb6   :  { %v84_v25 = vadd.f32 1e-08, %v82_v24 }
  0xb8   :  { %2283 = vrcp.f32 %v84_v25 }
  0xc2   :  { %v2284_v26 = vpop.eup %2283 }
  0xc3   :  { %v87_v28 = vmul.f32 %v2284_v26, %v2480_v0 }
  0xc5   :  { %v96_v29 = vmul.f32 %v2523_v27, %v87_v28 }
  0xc7   :  { %1972 = vmatmul.mubr.msk.f32.vlgmr.msra.gmra.mrb[0].mxu0 %vm61_vm0, %v96_v29 }
  0xc8   :  { %194 = vmatprep.mubr.f32.mxu0 %v2380_v10 }
 0x19a   :  { %v190_v35 = vpop.f32.mrb[0].mxu0 }
 0x19b   :  { %v192_v36 = vpop.f32.mrb[1].mxu0  ;;  %v2548_v44 = vadd.f32 %v190_v35, %v111_v43 }
 0x19c   :  { %v193_v37 = vadd.f32 %v192_v36, %v2535_v34 }
 0x19d   :  { %v235_v49 = vmul.f32 %v230_v46, %v2548_v44  ;;  %v215_v52 = vmul.f32 %v210_v45, %v2548_v44  ;;  %v205_v2 = vmul.f32 %v2515_v17, %v2548_v44 }
 0x19e   :  { %v237_v38 = vmul.f32 %v203_v16, %v193_v37 }
 0x1a0   :  { %241 = vrot.lane.b32.xlu1 %v237_v38, %s2382_s21 }
 0x1c4   :  { %66 = vadd.xlane.f32.xlu1 %v65_v41 }
 0x1d5   :  { %211 = vrot.lane.b32.xlu1 %v204_v47, %s2381_s20 }
 0x1d9   :  { %231 = vrot.lane.b32.xlu1 %v2556_v48, %s2382_s21 }
 0x212   :  { %v242_v50 = vpop.permute.xlu1 %241 }
 0x213   :  { %v2559_v51 = vadd.f32 %v242_v50, %v235_v49 }
 0x215   :  { %257 = vrot.lane.b32.xlu0 %v2559_v51, %s2381_s20 }
 0x219   :  { %219 = vrot.lane.b32.xlu0 %v215_v52, %s2382_s21 }
 0x251   :  { %v67_v53 = vpop.xlane.xlu1 %66 }
 0x252   :  { %2285 = vrsqrt.f32 %v67_v53  ;;  %vm77_vm4 = vcmp.eq.f32.partialorder %v67_v53, inf  ;;  %v80_v55 = vand.u32 2147483648, %v67_v53  ;;  %vm79_vm5 = vcmp.eq.f32.partialorder %v67_v53, 0.0 }
 0x255   :  { %v212_v6 = vpop.permute.xlu1 %211 }
 0x259   :  { %v232_v20 = vpop.permute.xlu1 %231 }
 0x25c   :  { %v2286_v54 = vpop.eup %2285 }
 0x25d   :  { %v76_v56 = vmul.f32 %v2286_v54, %v67_v53 }
 0x25f   :  { %v78_v57 = vsel %vm77_vm4, %v67_v53, %v76_v56 }
 0x260   :  { %v81_v58 = vsel %vm79_vm5, %v80_v55, %v78_v57 }
 0x261   :  { %v83_v59 = vmul.f32 0.17677669, %v81_v58 }
 0x263   :  { %v85_v60 = vadd.f32 1e-08, %v83_v59 }
 0x265   :  { %2287 = vrcp.f32 %v85_v60 }
 0x26f   :  { %v2288_v61 = vpop.eup %2287 }
 0x270   :  { %v89_v62 = vmul.f32 %v2288_v61, %v2542_v39 }
 0x272   :  { %v97_v63 = vmul.f32 %v2523_v27, %v89_v62 }
 0x274   :  { %1973 = vmatmul.mubr.msk.f32.gmra.mrb[2].mxu0 %vm61_vm0, %v97_v63 }
 0x275   :  { %2070 = vmatprep.mubr.msk.f32.mxu0 %vm2383_vm3, %v2380_v10 }
 0x287   :  { %v258_v1 = vpop.permute.xlu0 %257 }
 0x288   :  { %2069 = vmatpush3.xpose.msk.msra.mxu0 %vm259_vm6, %v258_v1 }
 0x289   :  { %2083 = vmatprep.subr.mxu0 %v2380_v10 }
 0x28b   :  { %v220_v3 = vpop.permute.xlu0 %219 }
 0x28c   :  { %v225_v4 = vadd.f32 %v220_v3, %v205_v2 }
 0x28e   :  { %2071 = vmatmul.mubr.msk.f32.vlgmr.msra.gmra.mrb[4].mxu0 %vm259_vm6, %v225_v4 }
 0x28f   :  { %2085 = vmatprep.mubr.msk.f32.mxu0 %vm2383_vm3, %v2380_v10 }
 0x347   :  { %v196_v5 = vpop.f32.mrb[2].mxu0 }
 0x348   :  { %v2579_v7 = vadd.f32 %v196_v5, %v111_v43  ;;  %v198_v8 = vpop.f32.mrb[3].mxu0 }
 0x349   :  { %v199_v18 = vadd.f32 %v198_v8, %v2535_v34 }
 0x34a   :  { %v216_v9 = vmul.f32 %v212_v6, %v2579_v7  ;;  %v236_v23 = vmul.f32 %v232_v20, %v2579_v7  ;;  %v206_v30 = vmul.f32 %v2556_v48, %v2579_v7 }
 0x34b   :  { %v238_v19 = vmul.f32 %v204_v47, %v199_v18 }
 0x34c   :  { %221 = vrot.lane.b32.xlu1 %v216_v9, %s2382_s21 }
 0x361   :  { %v331_v13 = vpop.f32.mrb[4].mxu0 }
 0x362   :  { %v335_v14 = vmul.f32 0.35355338, %v331_v13  ;;  %v2072_v15 = vpop.f32.mrb[5].mxu0 }
 0x364   :  { %v336_v16 = vadd.f32 %v2585_v12, %v335_v14 }
 0x366   :  { %v337_v17 = vsel %vm259_vm6, %v336_v16, -inf }
 0x367   :  { %338 = vmax.xlane.f32.xlu0 %v337_v17 }
 0x37d   :  { %243 = vrot.lane.b32.xlu0 %v238_v19, %s2382_s21 }
 0x381   :  { %349 = vrot.lane.b32.xlu0 %v2548_v44, %s2384_s4 }
 0x385   :  { %428 = vrot.lane.b32.xlu0 %v2559_v51, %s2385_s25 }
 0x389   :  { %426 = vrot.lane.b32.xlu0 %v225_v4, %s2386_s26 }
 0x38d   :  { %601 = vrot.lane.b32.xlu0 %v2559_v51, %s2387_s27 }
 0x391   :  { %599 = vrot.lane.b32.xlu0 %v225_v4, %s2388_s28 }
 0x395   :  { %772 = vrot.lane.b32.xlu0 %v225_v4, %s2389_s29 }
 0x3be   :  { %v222_v29 = vpop.permute.xlu1 %221 }
 0x3bf   :  { %v226_v31 = vadd.f32 %v222_v29, %v206_v30 }
 0x3f4   :  { %v339_v21 = vpop.xlane.xlu0 %338 }
 0x3f5   :  { %v340_v22 = vsub.f32 %v336_v16, %v339_v21 }
 0x3f7   :  { %v341_v24 = vmul.f32 1.442695, %v340_v22 }
 0x3f8   :  { %v244_v25 = vpop.permute.xlu0 %243 }
 0x3f9   :  { %2289 = vpow2.f32 %v341_v24  ;;  %v248_v26 = vadd.f32 %v244_v25, %v236_v23 }
 0x3fb   :  { %946 = vrot.lane.b32.xlu0 %v248_v26, %s2381_s20 }
 0x3fc   :  { %v350_v28 = vpop.permute.xlu0 %349 }
 0x3fd   :  { %2074 = vmatpush3.msra.mxu1 %v350_v28 }
 0x3fe   :  { %2078 = vmatprep.subr.mxu1 %v2380_v10 }
 0x3ff   :  { %1116 = vrot.lane.b32.xlu0 %v248_v26, %s2385_s25 }
 0x400   :  { %v429_v34 = vpop.permute.xlu0 %428 }
 0x403   :  { %v2290_v32 = vpop.eup %2289  ;;  %1114 = vrot.lane.b32.xlu0 %v226_v31, %s2386_s26 }
 0x404   :  { %v343_v33 = vsel %vm259_vm6, %v2290_v32, 0.0  ;;  %v427_v35 = vpop.permute.xlu0 %426 }
 0x405   :  { %344 = vadd.xlane.f32.xlu1 %v343_v33 }
 0x407   :  { %1286 = vrot.lane.b32.xlu0 %v226_v31, %s2388_s28 }
 0x408   :  { %v602_v37 = vpop.permute.xlu0 %601 }
 0x40b   :  { %1458 = vrot.lane.b32.xlu0 %v226_v31, %s2389_s29 }
 0x40c   :  { %v600_v38 = vpop.permute.xlu0 %599 }
 0x410   :  { %v773_v42 = vpop.permute.xlu0 %772 }
 0x416   :  { %774 = vrot.lane.b32.xlu1 %v2559_v51, %s2390_s30 }
 0x41a   :  { %1288 = vrot.lane.b32.xlu1 %v248_v26, %s2387_s27 }
 0x41e   :  { %1460 = vrot.lane.b32.xlu1 %v248_v26, %s2390_s30 }
 0x46d   :  { %v947_v43 = vpop.permute.xlu0 %946 }
 0x471   :  { %v1117_v46 = vpop.permute.xlu0 %1116 }
 0x475   :  { %v1115_v47 = vpop.permute.xlu0 %1114 }
 0x479   :  { %v1287_v49 = vpop.permute.xlu0 %1286 }
 0x47d   :  { %v1459_v51 = vpop.permute.xlu0 %1458 }
 0x492   :  { %v345_v36 = vpop.xlane.xlu1 %344 }
 0x493   :  { %2291 = vrcp.f32 %v345_v36 }
 0x496   :  { %v775_v45 = vpop.permute.xlu1 %774 }
 0x49a   :  { %v1289_v48 = vpop.permute.xlu1 %1288 }
 0x49d   :  { %v2292_v40 = vpop.eup %2291 }
 0x49e   :  { %v347_v41 = vmul.f32 %v2292_v40, %v2290_v32  ;;  %v1461_v50 = vpop.permute.xlu1 %1460 }
 0x4a0   :  { %2076 = vmatmul.mubr.msk.f32.vlgmr.msra.gmra.mrb[0].mxu1 %vm259_vm6, %v347_v41 }
 0x4a1   :  { %2079 = vmatpush3.xpose.msk.msra.mxu1 %vm259_vm6, %v429_v34  ;;  %2080 = vmatprep.mubr.msk.f32.mxu1 %vm2383_vm3, %v2380_v10 }
 0x4a2   :  { %2088 = vmatprep.subr.mxu1 %v2380_v10 }
 0x4a4   :  { %2081 = vmatmul.mubr.msk.f32.vlgmr.msra.gmra.mrb[2].mxu1 %vm259_vm6, %v427_v35 }
 0x4a5   :  { %2089 = vmatpush3.xpose.msk.msra.mxu1 %vm259_vm6, %v602_v37  ;;  %2090 = vmatprep.mubr.msk.f32.mxu1 %vm2383_vm3, %v2380_v10 }
 0x4a6   :  { %2098 = vmatprep.subr.mxu1 %v2380_v10 }
 0x4a8   :  { %2091 = vmatmul.mubr.msk.f32.vlgmr.msra.gmra.mrb[4].mxu1 %vm259_vm6, %v600_v38 }
 0x4a9   :  { %2099 = vmatpush3.xpose.msk.msra.mxu1 %vm259_vm6, %v775_v45  ;;  %2100 = vmatprep.mubr.msk.f32.mxu1 %vm2383_vm3, %v2380_v10 }
 0x4aa   :  { %2108 = vmatprep.subr.mxu1 %v2380_v10 }
 0x4ac   :  { %2101 = vmatmul.mubr.msk.f32.vlgmr.msra.gmra.mrb[6].mxu1 %vm259_vm6, %v773_v42 }
 0x4ad   :  { %2109 = vmatpush3.xpose.msk.msra.mxu1 %vm259_vm6, %v947_v43  ;;  %2110 = vmatprep.mubr.msk.f32.mxu1 %vm2383_vm3, %v2380_v10 }
 0x4ae   :  { %2118 = vmatprep.subr.mxu1 %v2380_v10 }
 0x4b0   :  { %2111 = vmatmul.mubr.msk.f32.vlgmr.msra.gmra.mrb[8].mxu1 %vm259_vm6, %v226_v31 }
 0x4b1   :  { %2119 = vmatpush3.xpose.msk.msra.mxu1 %vm259_vm6, %v1117_v46  ;;  %2120 = vmatprep.mubr.msk.f32.mxu1 %vm2383_vm3, %v2380_v10 }
 0x4b2   :  { %2128 = vmatprep.subr.mxu1 %v2380_v10 }
 0x4b4   :  { %2121 = vmatmul.mubr.msk.f32.vlgmr.msra.gmra.mrb[10].mxu1 %vm259_vm6, %v1115_v47 }
 0x4b5   :  { %2129 = vmatpush3.xpose.msk.msra.mxu1 %vm259_vm6, %v1289_v48  ;;  %2130 = vmatprep.mubr.msk.f32.mxu1 %vm2383_vm3, %v2380_v10 }
 0x4b6   :  { %2138 = vmatprep.subr.mxu1 %v2380_v10 }
 0x4b8   :  { %2131 = vmatmul.mubr.msk.f32.vlgmr.msra.gmra.mrb[12].mxu1 %vm259_vm6, %v1287_v49 }
 0x4b9   :  { %2139 = vmatpush3.xpose.msk.msra.mxu1 %vm259_vm6, %v1461_v50  ;;  %2140 = vmatprep.mubr.msk.f32.mxu1 %vm2383_vm3, %v2380_v10 }
 0x4bc   :  { %2141 = vmatmul.mubr.msk.f32.vlgmr.msra.gmra.mrb[14].mxu1 %vm259_vm6, %v1459_v51 }
 0x573   :  { %v421_v52 = vpop.f32.mrb[0].mxu1 }
 0x574   :  { %425 = vst.msk [vmem:[#allocation2] sm:$0xff] %vm259_vm6, %v421_v52  ;;  %v2077_v53 = vpop.f32.mrb[1].mxu1 }
 0x577   :  { %v500_v54 = vpop.f32.mrb[2].mxu1 }
 0x578   :  { %v504_v55 = vmul.f32 0.35355338, %v500_v54  ;;  %v2082_v56 = vpop.f32.mrb[3].mxu1 }
 0x57a   :  { %v505_v57 = vadd.f32 %v2585_v12, %v504_v55 }
 0x57b   :  { %v673_v58 = vpop.f32.mrb[4].mxu1 }
 0x57c   :  { %v677_v59 = vmul.f32 0.35355338, %v673_v58  ;;  %v2092_v60 = vpop.f32.mrb[5].mxu1  ;;  %v506_v61 = vsel %vm259_vm6, %v505_v57, -inf }
 0x57d   :  { %507 = vmax.xlane.f32.xlu1 %v506_v61 }
 0x57e   :  { %v678_v62 = vadd.f32 %v2585_v12, %v677_v59 }
 0x57f   :  { %v846_v63 = vpop.f32.mrb[6].mxu1 }
 0x580   :  { %v850_v1 = vmul.f32 0.35355338, %v846_v63  ;;  %v2102_v2 = vpop.f32.mrb[7].mxu1  ;;  %v679_v3 = vsel %vm259_vm6, %v678_v62, -inf }
 0x581   :  { %680 = vmax.xlane.f32.xlu0 %v679_v3 }
 0x582   :  { %v851_v4 = vadd.f32 %v2585_v12, %v850_v1 }
 0x583   :  { %v1019_v5 = vpop.f32.mrb[8].mxu1 }
 0x584   :  { %v1023_v6 = vmul.f32 0.35355338, %v1019_v5  ;;  %v2112_v8 = vpop.f32.mrb[9].mxu1  ;;  %v852_v9 = vsel %vm259_vm6, %v851_v4, -inf }
 0x585   :  { %853 = vmax.xlane.f32.xlu0 %v852_v9 }
 0x586   :  { %v1024_v11 = vadd.f32 %v2585_v12, %v1023_v6 }
 0x587   :  { %v1188_v13 = vpop.f32.mrb[10].mxu1 }
 0x588   :  { %v1192_v14 = vmul.f32 0.35355338, %v1188_v13  ;;  %v2122_v15 = vpop.f32.mrb[11].mxu1  ;;  %v1025_v16 = vsel %vm259_vm6, %v1024_v11, -inf }
 0x589   :  { %1026 = vmax.xlane.f32.xlu0 %v1025_v16 }
 0x58a   :  { %v1193_v17 = vadd.f32 %v2585_v12, %v1192_v14 }
 0x58b   :  { %v1360_v18 = vpop.f32.mrb[12].mxu1 }
 0x58c   :  { %v1364_v19 = vmul.f32 0.35355338, %v1360_v18  ;;  %v2132_v20 = vpop.f32.mrb[13].mxu1  ;;  %v1194_v21 = vsel %vm259_vm6, %v1193_v17, -inf }
 0x58d   :  { %1195 = vmax.xlane.f32.xlu1 %v1194_v21 }
 0x58e   :  { %v1365_v22 = vadd.f32 %v2585_v12, %v1364_v19 }
 0x58f   :  { %v1532_v23 = vpop.f32.mrb[14].mxu1 }
 0x590   :  { %v2142_v24 = vpop.f32.mrb[15].mxu1  ;;  %v1366_v25 = vsel %vm259_vm6, %v1365_v22, -inf  ;;  %v1536_v26 = vmul.f32 0.35355338, %v1532_v23 }
 0x591   :  { %1367 = vmax.xlane.f32.xlu0 %v1366_v25 }
 0x592   :  { %v1537_v28 = vadd.f32 %v2585_v12, %v1536_v26 }
 0x594   :  { %v1538_v29 = vsel %vm259_vm6, %v1537_v28, -inf }
 0x59e   :  { %517 = vrot.lane.b32.xlu1 %v2548_v44, %s2391_s15 }
 0x5c2   :  { %1539 = vmax.xlane.f32.xlu1 %v1538_v29 }
 0x5d3   :  { %863 = vrot.lane.b32.xlu1 %v2548_v44, %s2392_s16 }
 0x5d7   :  { %1037 = vrot.lane.b32.xlu1 %v2579_v7, %s2384_s4 }
 0x60a   :  { %v508_v30 = vpop.xlane.xlu1 %507 }
 0x60b   :  { %v509_v31 = vsub.f32 %v505_v57, %v508_v30 }
 0x60d   :  { %v510_v32 = vmul.f32 1.442695, %v509_v31 }
 0x60e   :  { %v681_v33 = vpop.xlane.xlu0 %680 }
 0x60f   :  { %2293 = vpow2.f32 %v510_v32  ;;  %v682_v34 = vsub.f32 %v678_v62, %v681_v33 }
 0x611   :  { %v683_v35 = vmul.f32 1.442695, %v682_v34 }
 0x612   :  { %v854_v42 = vpop.xlane.xlu0 %853 }
 0x613   :  { %2295 = vpow2.f32 %v683_v35  ;;  %v855_v43 = vsub.f32 %v851_v4, %v854_v42  ;;  %v1634_v42 = vld [vmem:[%s2827_s6 + $0x10] sm:$0xff] }
 0x615   :  { %v856_v47 = vmul.f32 1.442695, %v855_v43  ;;  %v1635_v43 = vld [vmem:[%s2827_s6 + $0x18] sm:$0xff] }
 0x616   :  { %v1027_v45 = vpop.xlane.xlu0 %1026 }
 0x617   :  { %v1028_v46 = vsub.f32 %v1024_v11, %v1027_v45  ;;  %2297 = vpow2.f32 %v856_v47 }
 0x619   :  { %v2294_v36 = vpop.eup %2293  ;;  %v1029_v50 = vmul.f32 1.442695, %v1028_v46  ;;  %v2217_v46 = vpack.c.bf16 %v1635_v43, %v1634_v42 }
 0x61a   :  { %v1196_v12 = vpop.xlane.xlu1 %1195  ;;  %v512_v37 = vsel %vm259_vm6, %v2294_v36, 0.0 }
 0x61b   :  { %513 = vadd.xlane.f32.xlu0 %v512_v37  ;;  %v1197_v48 = vsub.f32 %v1193_v17, %v1196_v12  ;;  %2299 = vpow2.f32 %v1029_v50 }
 0x61d   :  { %v2296_v38 = vpop.eup %2295  ;;  %v1198_v51 = vmul.f32 1.442695, %v1197_v48 }
 0x61e   :  { %v518_v40 = vpop.permute.xlu1 %517  ;;  %v685_v41 = vsel %vm259_vm6, %v2296_v38, 0.0  ;;  %v1368_v49 = vpop.xlane.xlu0 %1367 }
 0x61f   :  { %2084 = vmatpush3.msra.mxu0 %v518_v40  ;;  %686 = vadd.xlane.f32.xlu1 %v685_v41  ;;  %v1369_v52 = vsub.f32 %v1365_v22, %v1368_v49  ;;  %2301 = vpow2.f32 %v1198_v51 }
 0x620   :  { %2093 = vmatprep.subr.mxu0 %v2380_v10 }
 0x621   :  { %v1370_v53 = vmul.f32 1.442695, %v1369_v52  ;;  %v2298_v54 = vpop.eup %2297 }
 0x623   :  { %2303 = vpow2.f32 %v1370_v53 }
 0x625   :  { %v2300_v55 = vpop.eup %2299 }
 0x626   :  { %v1031_v61 = vsel %vm259_vm6, %v2300_v55, 0.0 }
 0x629   :  { %v2302_v57 = vpop.eup %2301 }
 0x62a   :  { %v1200_v60 = vsel %vm259_vm6, %v2302_v57, 0.0 }
 0x62d   :  { %v2304_v62 = vpop.eup %2303 }
 0x62e   :  { %v1372_v63 = vsel %vm259_vm6, %v2304_v62, 0.0 }
 0x630   :  { %1205 = vrot.lane.b32.xlu1 %v2579_v7, %s2391_s15 }
 0x631   :  { %690 = vrot.lane.b32.xlu0 %v2548_v44, %s2393_s17  ;;  %v858_v44 = vsel %vm259_vm6, %v2298_v54, 0.0 }
 0x64f   :  { %v1540_v56 = vpop.xlane.xlu1 %1539 }
 0x650   :  { %v1541_v58 = vsub.f32 %v1537_v28, %v1540_v56  ;;  %859 = vadd.xlane.f32.xlu0 %v858_v44 }
 0x652   :  { %v1542_v59 = vmul.f32 1.442695, %v1541_v58 }
 0x653   :  { %v864_v3 = vpop.permute.xlu1 %863 }
 0x654   :  { %2305 = vpow2.f32 %v1542_v59  ;;  %1201 = vadd.xlane.f32.xlu0 %v1200_v60  ;;  %1032 = vadd.xlane.f32.xlu1 %v1031_v61  ;;  %v1999_v60 = vld [vmem:[%s2828_s7] ss:$0 sm:$0xff] }
 0x657   :  { %v1038_v4 = vpop.permute.xlu1 %1037 }
 0x658   :  { %1373 = vadd.xlane.f32.xlu1 %v1372_v63 }
 0x65e   :  { %v2306_v1 = vpop.eup %2305 }
 0x65f   :  { %v1544_v2 = vsel %vm259_vm6, %v2306_v1, 0.0 }
 0x660   :  { %1545 = vadd.xlane.f32.xlu0 %v1544_v2 }
 0x669   :  { %1549 = vrot.lane.b32.xlu1 %v2579_v7, %s2392_s16 }
 0x676   :  { %1377 = vrot.lane.b32.xlu0 %v2579_v7, %s2393_s17 }
 0x6a8   :  { %v514_v5 = vpop.xlane.xlu0 %513 }
 0x6a9   :  { %2307 = vrcp.f32 %v514_v5 }
 0x6ac   :  { %v687_v6 = vpop.xlane.xlu1 %686  ;;  %v691_v11 = vpop.permute.xlu0 %690 }
 0x6ad   :  { %2309 = vrcp.f32 %v687_v6 }
 0x6b0   :  { %v1206_v7 = vpop.permute.xlu1 %1205 }
 0x6b3   :  { %v2308_v8 = vpop.eup %2307 }
 0x6b4   :  { %v516_v9 = vmul.f32 %v2308_v8, %v2294_v36 }
 0x6b6   :  { %2086 = vmatmul.mubr.msk.f32.vlgmr.msra.gmra.mrb[6].mxu0 %vm259_vm6, %v516_v9  ;;  %v1760_v9 = vld [vmem:[%s2829_s8 + $0x10] sm:$0xff] }
 0x6b7   :  { %v2310_v13 = vpop.eup %2309  ;;  %2094 = vmatpush3.msra.mxu0 %v691_v11  ;;  %2095 = vmatprep.mubr.msk.f32.mxu0 %vm2383_vm3, %v2380_v10 }
 0x6b8   :  { %v689_v14 = vmul.f32 %v2310_v13, %v2296_v38  ;;  %2103 = vmatprep.subr.mxu0 %v2380_v10  ;;  %v1632_v38 = vld [vmem:[%s2827_s6] sm:$0xff]  ;;  %v1761_v13 = vld [vmem:[%s2829_s8 + $0x18] sm:$0xff] }
 0x6ba   :  { %2096 = vmatmul.mubr.msk.f32.vlgmr.msra.gmra.mrb[8].mxu0 %vm259_vm6, %v689_v14  ;;  %v2225_v14 = vpack.c.bf16 %v1761_v13, %v1760_v9 }
 0x6bb   :  { %2104 = vmatpush3.msra.mxu0 %v864_v3  ;;  %2105 = vmatprep.mubr.msk.f32.mxu0 %vm2383_vm3, %v2380_v10 }
 0x6bc   :  { %2113 = vmatprep.subr.mxu0 %v2380_v10 }
 0x6dd   :  { %v860_v15 = vpop.xlane.xlu0 %859 }
 0x6de   :  { %2311 = vrcp.f32 %v860_v15  ;;  %v1853_v15 = vld [vmem:[%s2831_s10 + $0x8] sm:$0xff] }
 0x6e1   :  { %v1033_v16 = vpop.xlane.xlu1 %1032  ;;  %v1202_v17 = vpop.xlane.xlu0 %1201 }
 0x6e2   :  { %2313 = vrcp.f32 %v1033_v16  ;;  %v1854_v16 = vld [vmem:[%s2831_s10 + $0x10] sm:$0xff] }
 0x6e3   :  { %2315 = vrcp.f32 %v1202_v17 }
 0x6e5   :  { %v1374_v18 = vpop.xlane.xlu1 %1373 }
 0x6e6   :  { %2317 = vrcp.f32 %v1374_v18  ;;  %v1855_v18 = vld [vmem:[%s2831_s10 + $0x18] sm:$0xff] }
 0x6e8   :  { %v2312_v19 = vpop.eup %2311 }
 0x6e9   :  { %v862_v20 = vmul.f32 %v2312_v19, %v2298_v54  ;;  %v1550_v30 = vpop.permute.xlu1 %1549  ;;  %v2233_v19 = vpack.c.bf16 %v1855_v18, %v1854_v16 }
 0x6eb   :  { %2106 = vmatmul.mubr.msk.f32.vlgmr.msra.gmra.mrb[10].mxu0 %vm259_vm6, %v862_v20  ;;  %v1856_v20 = vld [vmem:[%s2831_s10 + $0x20] sm:$0xff] }
 0x6ec   :  { %v2314_v21 = vpop.eup %2313  ;;  %2114 = vmatpush3.msra.mxu0 %v1038_v4  ;;  %2115 = vmatprep.mubr.msk.f32.mxu0 %vm2383_vm3, %v2380_v10 }
 0x6ed   :  { %v1035_v22 = vmul.f32 %v2314_v21, %v2300_v55  ;;  %v1546_v23 = vpop.xlane.xlu0 %1545  ;;  %2123 = vmatprep.subr.mxu0 %v2380_v10  ;;  %v2316_v24 = vpop.eup %2315  ;;  %v1857_v21 = vld [vmem:[%s2831_s10 + $0x28] sm:$0xff] }
 0x6ee   :  { %2319 = vrcp.f32 %v1546_v23  ;;  %v1204_v25 = vmul.f32 %v2316_v24, %v2302_v57  ;;  %v1858_v23 = vld [vmem:[%s2831_s10 + $0x30] sm:$0xff]  ;;  %v1859_v24 = vld [vmem:[%s2831_s10 + $0x38] sm:$0xff] }
 0x6ef   :  { %2116 = vmatmul.mubr.msk.f32.vlgmr.msra.gmra.mrb[12].mxu0 %vm259_vm6, %v1035_v22  ;;  %v2237_v22 = vpack.c.bf16 %v1857_v21, %v1856_v20 }
 0x6f0   :  { %2124 = vmatpush3.msra.mxu0 %v1206_v7  ;;  %2125 = vmatprep.mubr.msk.f32.mxu0 %vm2383_vm3, %v2380_v10  ;;  %v2318_v28 = vpop.eup %2317  ;;  %v1852_v7 = vld [vmem:[%s2831_s10] sm:$0xff] }
 0x6f1   :  { %v1378_v26 = vpop.permute.xlu0 %1377  ;;  %2133 = vmatprep.subr.mxu0 %v2380_v10  ;;  %v1376_v29 = vmul.f32 %v2318_v28, %v2304_v62  ;;  %v2229_v17 = vpack.c.bf16 %v1853_v15, %v1852_v7  ;;  %v1861_v28 = vld [vmem:[%s2831_s10 + $0x48] sm:$0xff] }
 0x6f3   :  { %2126 = vmatmul.mubr.msk.f32.vlgmr.msra.gmra.mrb[14].mxu0 %vm259_vm6, %v1204_v25  ;;  %2230 = vmatprep.subr.bf16.mxu1 %v2229_v17  ;;  %v2241_v25 = vpack.c.bf16 %v1859_v24, %v1858_v23 }
 0x6f4   :  { %2134 = vmatpush3.msra.mxu0 %v1378_v26  ;;  %2135 = vmatprep.mubr.msk.f32.mxu0 %vm2383_vm3, %v2380_v10  ;;  %v1860_v26 = vld [vmem:[%s2831_s10 + $0x40] sm:$0xff] }
 0x6f5   :  { %2143 = vmatprep.subr.mxu0 %v2380_v10  ;;  %2232 = vmatpush3.bf16.msra.mxu1 %v2229_v17 }
 0x6f6   :  { %2234 = vmatprep.subr.bf16.mxu1 %v2233_v19 }
 0x6f7   :  { %2136 = vmatmul.mubr.msk.f32.vlgmr.msra.gmra.mrb[16].mxu0 %vm259_vm6, %v1376_v29  ;;  %v2245_v29 = vpack.c.bf16 %v1861_v28, %v1860_v26 }
 0x6f8   :  { %v2320_v31 = vpop.eup %2319  ;;  %2144 = vmatpush3.msra.mxu0 %v1550_v30  ;;  %2145 = vmatprep.mubr.msk.f32.mxu0 %vm2383_vm3, %v2380_v10  ;;  %v1633_v10 = vld [vmem:[%s2827_s6 + $0x8] sm:$0xff]  ;;  %v1862_v30 = vld [vmem:[%s2831_s10 + $0x50] sm:$0xff] }
 0x6f9   :  { %v1548_v32 = vmul.f32 %v2320_v31, %v2306_v1  ;;  %v2213_v40 = vpack.c.bf16 %v1633_v10, %v1632_v38  ;;  %2236 = vmatpush3.bf16.msra.mxu1 %v2233_v19  ;;  %v1863_v31 = vld [vmem:[%s2831_s10 + $0x58] sm:$0xff] }
 0x6fa   :  { %2238 = vmatprep.subr.bf16.mxu1 %v2237_v22 }
 0x6fb   :  { %2146 = vmatmul.mubr.msk.f32.vlgmr.msra.gmra.mrb[18].mxu0 %vm259_vm6, %v1548_v32  ;;  %2214 = vmatprep.subr.bf16.mxu0 %v2213_v40  ;;  %v2249_v32 = vpack.c.bf16 %v1863_v31, %v1862_v30 }
 0x6fc   :  { %2216 = vmatpush3.bf16.msra.mxu0 %v2213_v40 }
 0x6fd   :  { %2218 = vmatprep.subr.bf16.mxu0 %v2217_v46  ;;  %2240 = vmatpush3.bf16.msra.mxu1 %v2237_v22 }
 0x6fe   :  { %2242 = vmatprep.subr.bf16.mxu1 %v2241_v25 }
 0x700   :  { %2220 = vmatpush3.bf16.msra.mxu0 %v2217_v46 }
 0x701   :  { %2244 = vmatpush3.bf16.msra.mxu1 %v2241_v25 }
 0x702   :  { %2246 = vmatprep.subr.bf16.mxu1 %v2245_v29 }
 0x705   :  { %2248 = vmatpush3.bf16.msra.mxu1 %v2245_v29 }
 0x706   :  { %2250 = vmatprep.subr.bf16.mxu1 %v2249_v32 }
 0x709   :  { %2252 = vmatpush3.bf16.msra.mxu1 %v2249_v32 }
 0x789   :  { %v589_v33 = vpop.f32.mrb[6].mxu0 }
 0x78a   :  { %594 = vrot.lane.b32.xlu0 %v589_v33, %s2379_s14  ;;  %v2087_v34 = vpop.f32.mrb[7].mxu0  ;;  %v1864_v33 = vld [vmem:[%s2831_s10 + $0x60] sm:$0xff] }
 0x78b   :  { %v1865_v34 = vld [vmem:[%s2831_s10 + $0x68] sm:$0xff] }
 0x78d   :  { %v762_v35 = vpop.f32.mrb[8].mxu0 }
 0x78e   :  { %767 = vrot.lane.b32.xlu1 %v762_v35, %s2394_s18  ;;  %v2097_v36 = vpop.f32.mrb[9].mxu0  ;;  %v2253_v35 = vpack.c.bf16 %v1865_v34, %v1864_v33 }
 0x790   :  { %2254 = vmatprep.subr.bf16.mxu1 %v2253_v35 }
 0x791   :  { %2256 = vmatpush3.bf16.msra.mxu1 %v2253_v35 }
 0x7be   :  { %v935_v12 = vpop.f32.mrb[10].mxu0 }
 0x7bf   :  { %940 = vrot.lane.b32.xlu1 %v935_v12, %s2395_s19  ;;  %v2107_v37 = vpop.f32.mrb[11].mxu0 }
 0x7c2   :  { %v1109_v41 = vpop.f32.mrb[12].mxu0 }
 0x7c3   :  { %1113 = vst.msk [vmem:[#allocation2 + $0x8] sm:$0xff] %vm259_vm6, %v1109_v41  ;;  %v2117_v45 = vpop.f32.mrb[13].mxu0 }
 0x7c6   :  { %v1277_v47 = vpop.f32.mrb[14].mxu0 }
 0x7c7   :  { %1282 = vrot.lane.b32.xlu0 %v1277_v47, %s2379_s14  ;;  %v2127_v48 = vpop.f32.mrb[15].mxu0 }
 0x7ca   :  { %v1449_v49 = vpop.f32.mrb[16].mxu0 }
 0x7cb   :  { %1454 = vrot.lane.b32.xlu0 %v1449_v49, %s2394_s18  ;;  %v2137_v50 = vpop.f32.mrb[17].mxu0 }
 0x7ce   :  { %v1621_v51 = vpop.f32.mrb[18].mxu0 }
 0x7cf   :  { %1626 = vrot.lane.b32.xlu1 %v1621_v51, %s2395_s19  ;;  %v2147_v52 = vpop.f32.mrb[19].mxu0 }
 0x7fc   :  { %v595_v53 = vpop.permute.xlu0 %594 }
 0x7fd   :  { %598 = vst.msk [vmem:[#allocation2] sm:$0xff] %vm597_vm8, %v595_v53 }
 0x800   :  { %v768_v54 = vpop.permute.xlu1 %767 }
 0x801   :  { %771 = vst.msk [vmem:[#allocation2] sm:$0xff] %vm770_vm9, %v768_v54 }
 0x831   :  { %v941_v55 = vpop.permute.xlu1 %940 }
 0x832   :  { %944 = vst.msk [vmem:[#allocation2] sm:$0xff] %vm943_vm10, %v941_v55 }
 0x839   :  { %v1283_v56 = vpop.permute.xlu0 %1282  ;;  %v1630_v44 = vld [vmem:[#allocation2] sm:$0xff] }
 0x83a   :  { %1285 = vst.msk [vmem:[#allocation2 + $0x8] sm:$0xff] %vm597_vm8, %v1283_v56  ;;  %2156 = vmatprep.mubr.msk.f32.mxu0 %vm61_vm0, %v1630_v44 }
 0x83d   :  { %v1455_v57 = vpop.permute.xlu0 %1454 }
 0x83e   :  { %1457 = vst.msk [vmem:[#allocation2 + $0x8] sm:$0xff] %vm770_vm9, %v1455_v57  ;;  %v1866_v57 = vld [vmem:[%s2831_s10 + $0x70] sm:$0xff] }
 0x841   :  { %v1627_v58 = vpop.permute.xlu1 %1626 }
 0x842   :  { %1629 = vst.msk [vmem:[#allocation2 + $0x8] sm:$0xff] %vm943_vm10, %v1627_v58  ;;  %v1867_v58 = vld [vmem:[%s2831_s10 + $0x78] sm:$0xff]  ;;  %s2396_s10 = smov [#allocation6]  }
 0x843   :  { %s1959_s22 = sshll.u32 %s2396_s10, 4  ;;  %s1960_s22 = int_to_ptr.vmem [resolvable:$true] %s1959_s22 }
 0x844   :  { %p2356_p9 = scmp.lt.s32.totalorder %s1960_s22, %s1960_s22 }
 0x849   :  { %v1631_v59 = vld [vmem:[#allocation2 + $0x8] sm:$0xff] }
 0x84a   :  { %2157 = vmatmul.mubr.msk.f32.vlgmr.msra.gmra.mrb[20].mxu0 %vm61_vm0, %v1631_v59  ;;  %v2257_v59 = vpack.c.bf16 %v1867_v58, %v1866_v57 }
 0x84c   :  { %2258 = vmatprep.subr.bf16.mxu1 %v2257_v59 }
 0x84d   :  { %2260 = vmatpush3.bf16.msra.mxu1 %v2257_v59 }
 0x91d   :  { %v2158_v61 = vpop.f32.mrb[20].mxu0 }
 0x91e   :  { %v1721_v62 = vadd.f32 %v2158_v61, %v1999_v60  ;;  %v1715_v63 = vpop.f32.mrb[21].mxu0 }
 0x91f   :  { %v1716_v1 = vadd.f32 %v1999_v60, %v1715_v63  ;;  %v2002_v60 = vld [vmem:[%s2830_s9] ss:$0 sm:$0xff]  ;;  %s2351_s9 = scalar_lea.vmem %s1960_s22, 256 }
 0x920   :  { %v2719_v2 = vadd.f32 %v1721_v62, %v2542_v39  ;;  %v1758_v39 = vld [vmem:[%s2829_s8] sm:$0xff]  ;;  %p2352_p8 = scmp.ne.s32.totalorder %s1960_s22, %s2351_s9  ;;  %p2357_p10 = scmp.lt.s32.totalorder %s2351_s9, %s2351_s9 }
 0x921   :  { %v2722_v3 = vadd.f32 %v1716_v1, %v2480_v0  ;;  %v1759_v0 = vld [vmem:[%s2829_s8 + $0x8] sm:$0xff] }
 0x922   :  { %v1727_v4 = vmul.f32 %v2719_v2, %v2719_v2  ;;  %v2221_v11 = vpack.c.bf16 %v1759_v0, %v1758_v39  ;;  %p2358_p11 = por %p2357_p10, %p2356_p9 }
 0x923   :  { %v1726_v5 = vmul.f32 %v2722_v3, %v2722_v3 }
 0x924   :  { %v1731_v6 = vsel %vm61_vm0, %v1727_v4, 0.0  ;;  %2222 = vmatprep.subr.bf16.mxu0 %v2221_v11  ;;  %p2359_p12 = pnand %p2358_p11, %p2352_p8 }
 0x925   :  { %1732 = vadd.xlane.f32.xlu1 %v1731_v6  ;;  %v1728_v8 = vsel %vm61_vm0, %v1726_v5, 0.0  ;;  %2224 = vmatpush3.bf16.msra.mxu0 %v2221_v11  ;;  %v2005_v5 = vld [vmem:[%s2832_s11] ss:$0 sm:$0xff] }
 0x926   :  { %1729 = vadd.xlane.f32.xlu0 %v1728_v8  ;;  %2226 = vmatprep.subr.bf16.mxu0 %v2225_v14 }
 0x929   :  { %2228 = vmatpush3.bf16.msra.mxu0 %v2225_v14 }
 0x9b2   :  { %v1733_v36 = vpop.xlane.xlu1 %1732 }
 0x9b3   :  { %2321 = vrsqrt.f32 %v1733_v36  ;;  %v1730_v12 = vpop.xlane.xlu0 %1729  ;;  %vm1743_vm11 = vcmp.eq.f32.partialorder %v1733_v36, inf  ;;  %v1746_v40 = vand.u32 2147483648, %v1733_v36  ;;  %vm1745_vm12 = vcmp.eq.f32.partialorder %v1733_v36, 0.0 }
 0x9b4   :  { %2323 = vrsqrt.f32 %v1730_v12  ;;  %vm1736_vm13 = vcmp.eq.f32.partialorder %v1730_v12, inf  ;;  %v1739_v43 = vand.u32 2147483648, %v1730_v12  ;;  %vm1738_vm14 = vcmp.eq.f32.partialorder %v1730_v12, 0.0 }
 0x9bd   :  { %v2322_v37 = vpop.eup %2321 }
 0x9be   :  { %v2324_v38 = vpop.eup %2323  ;;  %v1742_v10 = vmul.f32 %v2322_v37, %v1733_v36 }
 0x9bf   :  { %v1735_v41 = vmul.f32 %v2324_v38, %v1730_v12 }
 0x9c0   :  { %v1744_v42 = vsel %vm1743_vm11, %v1733_v36, %v1742_v10 }
 0x9c1   :  { %v1747_v45 = vsel %vm1745_vm12, %v1746_v40, %v1744_v42  ;;  %v1737_v46 = vsel %vm1736_vm13, %v1730_v12, %v1735_v41 }
 0x9c2   :  { %v1749_v47 = vmul.f32 0.17677669, %v1747_v45  ;;  %v1740_v48 = vsel %vm1738_vm14, %v1739_v43, %v1737_v46 }
 0x9c3   :  { %v1748_v49 = vmul.f32 0.17677669, %v1740_v48 }
 0x9c4   :  { %v1751_v50 = vadd.f32 1e-08, %v1749_v47 }
 0x9c5   :  { %v1750_v51 = vadd.f32 1e-08, %v1748_v49 }
 0x9c6   :  { %2325 = vrcp.f32 %v1751_v50 }
 0x9c7   :  { %2327 = vrcp.f32 %v1750_v51 }
 0x9d0   :  { %v2326_v52 = vpop.eup %2325 }
 0x9d1   :  { %v2328_v53 = vpop.eup %2327  ;;  %v1755_v54 = vmul.f32 %v2326_v52, %v2719_v2 }
 0x9d2   :  { %v1753_v55 = vmul.f32 %v2328_v53, %v2722_v3 }
 0x9d3   :  { %v1757_v44 = vmul.f32 %v2523_v27, %v1755_v54 }
 0x9d4   :  { %v1756_v56 = vmul.f32 %v2523_v27, %v1753_v55 }
 0x9d6   :  { %2167 = vmatprep.mubr.msk.f32.mxu0 %vm61_vm0, %v1756_v56 }
 0x9d7   :  { %2168 = vmatmul.mubr.msk.f32.vlgmr.msra.gmra.mrb[22].mxu0 %vm61_vm0, %v1757_v44 }
 0xaaa   :  { %v2169_v27 = vpop.f32.mrb[22].mxu0 }
 0xaab   :  { %v1847_v61 = vadd.f32 %v2169_v27, %v2002_v60  ;;  %v1841_v62 = vpop.f32.mrb[23].mxu0 }
 0xaac   :  { %v1842_v63 = vadd.f32 %v2002_v60, %v1841_v62 }
 0xaad   :  { %v1851_v4 = vmax.f32 %v1847_v61, 0.0 }
 0xaae   :  { %v1850_v1 = vmax.f32 %v1842_v63, 0.0 }
 0xab0   :  { %2202 = vmatprep.mubr.f32.mxu1 %v1850_v1 }
 0xab1   :  { %2203 = vmatmul.mubr.f32.vlgmr.msra.gmra.mrb[16].mxu1 %v1851_v4 }
 0xb84   :  { %v2204_v6 = vpop.f32.mrb[16].mxu1 }
 0xb85   :  { %v1947_v8 = vadd.f32 %v2204_v6, %v2005_v5  ;;  %v1941_v39 = vpop.f32.mrb[17].mxu1 }
 0xb86   :  { %v1942_v0 = vadd.f32 %v2005_v5, %v1941_v39 }
 0xb87   :  { %v1951_v9 = vadd.f32 %v1947_v8, %v2719_v2 }
 0xb88   :  { %v1950_v11 = vadd.f32 %v1942_v0, %v2722_v3 }
 0xb89   :  { %1953 = vst.msk [vmem:[#allocation6 + $0x8] sm:$0xff] %vm61_vm0, %v1951_v9 }
 0xb8a   :  { %1952 = vst.msk [vmem:[#allocation6] sm:$0xff] %vm61_vm0, %v1950_v11 }
 0xb8b   :  { %2362 = shalt.err (!%p2359_p12)
}
 0xb8c   :  { %s2363_s1 = scalar_lea.hbm %s2833_s12, 256 }
 0xb8d   :  { %p2364_p13 = scmp.ne.s32.totalorder %s2833_s12, %s2363_s1  ;;  %p2367_p0 = scmp.lt.u32.totalorder %s2363_s1, %s2833_s12 }
 0xb8f   :  { %p2369_p1 = pnand %p2367_p0, %p2364_p13 }
 0xb91   :  { %2372 = shalt.err (!%p2369_p1)
}
 0xb92   :  { %1965 = dma.vmem_to_hbm [thread:$0]  %s1960_s22, 256, %s2833_s12, [#allocation5], %s2378_s13, %s2378_s13, %s2379_s14  }
 0xb93   :  { %2375 = dma.done.wait [#allocation5], 256  }
 0xb94   :  { %2376 = vsyncadd [#allocation5], 4294967040 }
 0xb95   :  { %1969 = vsyncpa [#allocation4], 1 }
 0xb96   :  { %1970 = vsyncpa [#allocation5], 1 }

</bundles_post_ra>
